<compile_context>
chip_gen: v7x
topology: tpu7x:2x2x1
jax: 0.10.0
libtpu: 0.0.40
codegen_flags: <defaults>
</compile_context>

<pallas_src>
import functools

import jax
import jax.numpy as jnp
import numpy as np
from jax import lax
from jax.experimental import pallas as pl
from jax.experimental.pallas import tpu as pltpu

LN_EPS = 1e-5  # torch.nn.LayerNorm default


def _round_up(v, m):
    return ((v + m - 1) // m) * m


def _cdiv(a, b):
    return (a + b - 1) // b


def mha_kernel(x_ref, wqkv_ref, cs_ref, maxsel_ref, expand_ref, owp_ref, o_ref, *,
               pack, d_model, num_heads, d_k, d_v, n_shifts):
    P, D, H = pack, d_model, num_heads
    HH = H * H
    nqk, nvv = HH * d_k, HH * d_v
    Sw = P * HH
    PD = P * D

    x = x_ref[...].astype(jnp.float32)                        # (tn, P*D) packed tokens

    # Fused block-diagonal QKV projection (Q pre-scaled by 1/sqrt(d_k)).
    # Bias stays a single VPU broadcast-add on resident data (see header note).
    w = wqkv_ref[0:PD, :]
    b = wqkv_ref[PD:PD + 1, :]
    y_all = jnp.dot(x, w, preferred_element_type=jnp.float32) + b   # (tn, P*(2nqk+nvv))

    qe = y_all[:, :P * nqk]                 # scale*q expanded over (h,g) pairs, token-major
    ke = y_all[:, P * nqk:2 * P * nqk]      # k expanded over (h,g) pairs
    ve = y_all[:, 2 * P * nqk:]             # v tiled H times per token

    # scores[n, t*H*H + p] = sum_d qe[n, t*nqk + p*d_k + d] * ke[n, same]
    prod = qe * ke
    scores = jnp.dot(prod, cs_ref[...], preferred_element_type=jnp.float32)   # (tn, Sw)

    # Exact per-(token, head) group max via within-group rotation matmuls:
    # after ceil(log2(H)) max steps every column holds its group's max, so the
    # softmax stabilizer is constant inside each group and denom >= 1 (no NaN).
    m = scores
    for s in range(n_shifts):
        perm = maxsel_ref[s * Sw:(s + 1) * Sw, :]
        m = jnp.maximum(m, jnp.dot(m, perm, preferred_element_type=jnp.float32))
    e = jnp.exp(scores - m)
    gsum = maxsel_ref[n_shifts * Sw:(n_shifts + 1) * Sw, :]
    denom = jnp.dot(e, gsum, preferred_element_type=jnp.float32)
    p = e * pl.reciprocal(denom, approx=False)

    # Expand probs to d_v lanes, weight V, then apply the (per-head group-sum +
    # output projection) folded into one block-diagonal matmul.
    pe = jnp.dot(p, expand_ref[...], preferred_element_type=jnp.float32)      # (tn, P*nvv)
    weighted = pe * ve
    wo = owp_ref[0:P * nvv, :]
    y = jnp.dot(weighted, wo, preferred_element_type=jnp.float32)             # (tn, P*D)

    off = P * nvv + PD
    y = y + owp_ref[off:off + 1, :]                                           # + b_o

    # Segmented LayerNorm (one d_model segment per packed token), kept
    # lane-dense via a block-diagonal averaging matmul.
    avg = owp_ref[P * nvv:off, :]
    mean_b = jnp.dot(y, avg, preferred_element_type=jnp.float32)
    cent = y - mean_b
    var_b = jnp.dot(cent * cent, avg, preferred_element_type=jnp.float32)
    yn = cent * lax.rsqrt(var_b + LN_EPS)
    yn = yn * owp_ref[off + 1:off + 2, :] + owp_ref[off + 2:off + 3, :]       # gamma, beta

    o_ref[...] = (x + yn).astype(o_ref.dtype)


def _pick_row_tile(rows):
    """Pick (rows_per_tile, padded_rows, vmem_limit_bytes) for the 1-D grid."""
    try:
        vmem_cap = int(pltpu.get_tpu_info().vmem_capacity_bytes)
    except Exception:
        vmem_cap = None
    if vmem_cap is not None and vmem_cap >= 100 * 1024 * 1024:
        # v5e / v6e (128 MiB physical VMEM): big tiles amortize grid overhead.
        target, vmem_limit = 2048, 96 * 1024 * 1024      # 8192 tokens / tile
    else:
        # v7x (64 MiB VMEM) or unknown: smaller tiles, leave headroom.
        target, vmem_limit = 1024, 40 * 1024 * 1024      # 4096 tokens / tile
    n_tiles = _cdiv(rows, target)
    if n_tiles > 1 and n_tiles % 2 == 1:
        n_tiles += 1          # even grid -> both v7x TensorCores stay busy
    tile = _round_up(_cdiv(rows, n_tiles), 8)
    return tile, tile * n_tiles, vmem_limit


def multi_head_attention(x, params, *, d_k, d_v, num_heads):
    B, S, D = x.shape
    H = num_heads
    N = B * S
    HH = H * H
    nqk, nvv = HH * d_k, HH * d_v

    # Pack as many whole tokens as fit into the 128-lane vreg width.
    P = 128 // D if (D <= 128 and 128 % D == 0) else 1
    Sw = P * HH
    PD = P * D
    scale = 1.0 / float(np.sqrt(d_k))
    f32 = jnp.float32

    # ---------------- host-side constant / weight preparation ----------------
    # (depends only on the parameters; in a real model this would be cached)
    cqk = np.arange(nqk)
    src_q = (cqk // (H * d_k)) * d_k + (cqk % d_k)        # pair p=h*H+g -> head h
    src_k = ((cqk // d_k) % H) * d_k + (cqk % d_k)        # pair p=h*H+g -> head g
    cv = np.arange(nvv)
    src_v = cv % (H * d_v)                                # tile V over the h axis
    src_o = (cv // (H * d_v)) * d_v + (cv % d_v)          # fold group-sum into W_o

    eye_p = jnp.eye(P, dtype=f32)
    wq_e = params["wq"].T.astype(f32)[:, src_q] * scale   # (D, nqk)
    wk_e = params["wk"].T.astype(f32)[:, src_k]           # (D, nqk)
    wv_e = params["wv"].T.astype(f32)[:, src_v]           # (D, nvv)
    w_bd = jnp.concatenate(
        [jnp.kron(eye_p, wq_e), jnp.kron(eye_p, wk_e), jnp.kron(eye_p, wv_e)],
        axis=1)                                           # (P*D, P*(2nqk+nvv))
    b_bd = jnp.concatenate(
        [jnp.tile(params["bq"].astype(f32)[src_q] * scale, P),
         jnp.tile(params["bk"].astype(f32)[src_k], P),
         jnp.tile(params["bv"].astype(f32)[src_v], P)])
    wqkv = jnp.concatenate([w_bd, b_bd[None, :]], axis=0)  # (P*D+1, Wtot)

    wo_e = params["wo"].T.astype(f32)[src_o, :]            # (nvv, D)
    wo_bd = jnp.kron(eye_p, wo_e)                          # (P*nvv, P*D)
    avg = jnp.asarray(
        (np.arange(PD)[:, None] // D == np.arange(PD)[None, :] // D)
        .astype(np.float32) / D)                           # segmented-mean selector
    post = jnp.stack([jnp.tile(params["bo"].astype(f32), P),
                      jnp.tile(params["gamma"].astype(f32), P),
                      jnp.tile(params["beta"].astype(f32), P)])   # (3, P*D)
    owp = jnp.concatenate([wo_bd, avg, post], axis=0)      # (P*nvv + P*D + 3, P*D)

    # 0/1 structural selectors, hoisted out of the kernel body.
    cs = jnp.asarray((np.arange(P * nqk)[:, None] // d_k ==
                      np.arange(Sw)[None, :]).astype(np.float32))   # (P*nqk, Sw)
    shifts = []
    r = 1
    while r < H:
        shifts.append(r)
        r *= 2
    s_idx = np.arange(Sw)
    blocks = []
    for r in shifts:                                       # within-group rotations
        src = (s_idx // H) * H + ((s_idx % H) + r) % H
        perm = np.zeros((Sw, Sw), np.float32)
        perm[src, s_idx] = 1.0
        blocks.append(perm)
    blocks.append((s_idx[:, None] // H == s_idx[None, :] // H).astype(np.float32))
    maxsel = jnp.asarray(np.concatenate(blocks, axis=0))   # ((n_shifts+1)*Sw, Sw)
    expand = jnp.asarray((s_idx[:, None] ==
                          np.arange(P * nvv)[None, :] // d_v).astype(np.float32))

    # ---------------- pack tokens, pad, and tile the grid --------------------
    xf = x.reshape(N, D).astype(f32)
    n_pad = _round_up(N, P)
    if n_pad != N:
        xf = jnp.concatenate([xf, jnp.zeros((n_pad - N, D), f32)], axis=0)
    rows = n_pad // P
    x_packed = xf.reshape(rows, PD)

    tile, padded_rows, vmem_limit = _pick_row_tile(rows)
    if padded_rows != rows:
        x_packed = jnp.concatenate(
            [x_packed, jnp.zeros((padded_rows - rows, PD), f32)], axis=0)

    kernel = functools.partial(
        mha_kernel, pack=P, d_model=D, num_heads=H, d_k=d_k, d_v=d_v,
        n_shifts=len(shifts))

    out = pl.pallas_call(
        kernel,
        out_shape=jax.ShapeDtypeStruct((padded_rows, PD), x.dtype),
        grid=(padded_rows // tile,),
        in_specs=[
            pl.BlockSpec((tile, PD), lambda i: (i, 0)),     # packed tokens (tiled)
            pl.BlockSpec(wqkv.shape, lambda i: (0, 0)),     # QKV block-diag weights + bias
            pl.BlockSpec(cs.shape, lambda i: (0, 0)),       # score chunk-sum selector
            pl.BlockSpec(maxsel.shape, lambda i: (0, 0)),   # group-max perms + group-sum
            pl.BlockSpec(expand.shape, lambda i: (0, 0)),   # prob -> d_v expansion
            pl.BlockSpec(owp.shape, lambda i: (0, 0)),      # W_o / LN-avg / bo,gamma,beta
        ],
        out_specs=pl.BlockSpec((tile, PD), lambda i: (i, 0)),
        compiler_params=pltpu.CompilerParams(
            dimension_semantics=("parallel",),
            vmem_limit_bytes=vmem_limit),
    )(x_packed, wqkv, cs, maxsel, expand, owp)

    out = out[:rows].reshape(n_pad, D)[:N].reshape(B, S, D)
    return out.astype(x.dtype)


def reference(x, params, *, d_k, d_v, num_heads):
    """Pure-JAX mirror of the PyTorch forward, for validation."""
    B, S, D = x.shape
    N = B * S
    xf = x.reshape(N, D)
    q = (xf @ params["wq"].T + params["bq"]).reshape(N, num_heads, d_k)
    k = (xf @ params["wk"].T + params["bk"]).reshape(N, num_heads, d_k)
    v = (xf @ params["wv"].T + params["bv"]).reshape(N, num_heads, d_v)
    aw = jnp.einsum("nhd,ngd->nhg", q, k) / jnp.sqrt(jnp.float32(d_k))
    aw = jax.nn.softmax(aw, axis=-1)
    y = jnp.einsum("nhg,ngd->nhd", aw, v).reshape(B, S, num_heads * d_v)
    y = y @ params["wo"].T + params["bo"]
    mean = y.mean(-1, keepdims=True)
    var = ((y - mean) ** 2).mean(-1, keepdims=True)
    y = (y - mean) / jnp.sqrt(var + LN_EPS) * params["gamma"] + params["beta"]
    return x + y


if __name__ == "__main__":
    # Small shapes consistent with the module's forward.
    B, S = 2, 8
    d_model, num_heads, d_k, d_v = 32, 4, 8, 8

    key = jax.random.PRNGKey(0)
    kx, k1, k2, k3, k4, k5, k6, k7, k8 = jax.random.split(key, 9)

    x = jax.random.normal(kx, (B, S, d_model), dtype=jnp.float32)

    def init_w(k, out_dim, in_dim):
        return 0.1 * jax.random.normal(k, (out_dim, in_dim), dtype=jnp.float32)

    params = {
        "wq": init_w(k1, num_heads * d_k, d_model),
        "bq": 0.1 * jax.random.normal(k2, (num_heads * d_k,), dtype=jnp.float32),
        "wk": init_w(k3, num_heads * d_k, d_model),
        "bk": 0.1 * jax.random.normal(k4, (num_heads * d_k,), dtype=jnp.float32),
        "wv": init_w(k5, num_heads * d_v, d_model),
        "bv": 0.1 * jax.random.normal(k6, (num_heads * d_v,), dtype=jnp.float32),
        "wo": init_w(k7, d_model, num_heads * d_v),
        "bo": 0.1 * jax.random.normal(k8, (d_model,), dtype=jnp.float32),
        "gamma": jnp.ones((d_model,), dtype=jnp.float32),   # torch LayerNorm init
        "beta": jnp.zeros((d_model,), dtype=jnp.float32),
    }

    y = multi_head_attention(x, params, d_k=d_k, d_v=d_v, num_heads=num_heads)
    y = jax.block_until_ready(y)

    y_ref = reference(x, params, d_k=d_k, d_v=d_v, num_heads=num_heads)
    np.testing.assert_allclose(np.asarray(y), np.asarray(y_ref),
                               rtol=1e-4, atol=1e-4)
    print("KERNEL_OK")
</pallas_src>

<mosaic_0001>
module attributes {stable_mosaic.version = 11 : i64} {
  func.func @mha_kernel(%arg0: i32, %arg1: memref<8x128xf32, #tpu.memory_space<vmem>>, %arg2: memref<129x1536xf32, #tpu.memory_space<vmem>>, %arg3: memref<512x64xf32, #tpu.memory_space<vmem>>, %arg4: memref<192x64xf32, #tpu.memory_space<vmem>>, %arg5: memref<64x512xf32, #tpu.memory_space<vmem>>, %arg6: memref<643x128xf32, #tpu.memory_space<vmem>>, %arg7: memref<8x128xf32, #tpu.memory_space<vmem>>) attributes {dimension_semantics = [#tpu.dimension_semantics<parallel>], iteration_bounds = array<i64: 1>, scalar_prefetch = 0 : i64, scratch_operands = 0 : i64, tpu.core_type = #tpu.core_type<tc>, window_params = [{transform_indices = @transform_0, window_bounds = array<i64: 8, 128>}, {pipeline_mode = #tpu.pipeline_mode<synchronous>, transform_indices = @transform_1, window_bounds = array<i64: 129, 1536>}, {pipeline_mode = #tpu.pipeline_mode<synchronous>, transform_indices = @transform_2, window_bounds = array<i64: 512, 64>}, {pipeline_mode = #tpu.pipeline_mode<synchronous>, transform_indices = @transform_3, window_bounds = array<i64: 192, 64>}, {pipeline_mode = #tpu.pipeline_mode<synchronous>, transform_indices = @transform_4, window_bounds = array<i64: 64, 512>}, {pipeline_mode = #tpu.pipeline_mode<synchronous>, transform_indices = @transform_5, window_bounds = array<i64: 643, 128>}, {transform_indices = @transform_6, window_bounds = array<i64: 8, 128>}]} {
    %c0 = arith.constant 0 : index
    %c0_0 = arith.constant 0 : index
    %0 = vector.load %arg1[%c0, %c0_0] : memref<8x128xf32, #tpu.memory_space<vmem>>, vector<8x128xf32>
    %c0_1 = arith.constant 0 : index
    %c0_2 = arith.constant 0 : index
    %1 = vector.load %arg2[%c0_1, %c0_2] : memref<129x1536xf32, #tpu.memory_space<vmem>>, vector<128x1536xf32>
    %c128 = arith.constant 128 : index
    %c0_3 = arith.constant 0 : index
    %2 = vector.load %arg2[%c128, %c0_3] : memref<129x1536xf32, #tpu.memory_space<vmem>>, vector<1x1536xf32>
    %cst = arith.constant dense<0.000000e+00> : vector<8x1536xf32>
    %3 = tpu.matmul %0, %1, %cst {dimension_numbers = #tpu.dot_dimension_numbers<[1], [0], [0], [1], [0, 0, 1, 1], [], []>} : vector<8x128xf32>, vector<128x1536xf32>, vector<8x1536xf32> -> vector<8x1536xf32>
    %4 = vector.broadcast %2 : vector<1x1536xf32> to vector<8x1536xf32>
    %5 = arith.addf %3, %4 : vector<8x1536xf32>
    %6 = vector.extract_strided_slice %5 {offsets = [0, 0], sizes = [8, 512], strides = [1, 1]} : vector<8x1536xf32> to vector<8x512xf32>
    %7 = vector.extract_strided_slice %5 {offsets = [0, 512], sizes = [8, 512], strides = [1, 1]} : vector<8x1536xf32> to vector<8x512xf32>
    %8 = vector.extract_strided_slice %5 {offsets = [0, 1024], sizes = [8, 512], strides = [1, 1]} : vector<8x1536xf32> to vector<8x512xf32>
    %9 = arith.mulf %6, %7 : vector<8x512xf32>
    %c0_4 = arith.constant 0 : index
    %c0_5 = arith.constant 0 : index
    %10 = vector.load %arg3[%c0_4, %c0_5] : memref<512x64xf32, #tpu.memory_space<vmem>>, vector<512x64xf32>
    %cst_6 = arith.constant dense<0.000000e+00> : vector<8x64xf32>
    %11 = tpu.matmul %9, %10, %cst_6 {dimension_numbers = #tpu.dot_dimension_numbers<[1], [0], [0], [1], [0, 0, 1, 1], [], []>} : vector<8x512xf32>, vector<512x64xf32>, vector<8x64xf32> -> vector<8x64xf32>
    %c0_7 = arith.constant 0 : index
    %c0_8 = arith.constant 0 : index
    %12 = vector.load %arg4[%c0_7, %c0_8] : memref<192x64xf32, #tpu.memory_space<vmem>>, vector<64x64xf32>
    %cst_9 = arith.constant dense<0.000000e+00> : vector<8x64xf32>
    %13 = tpu.matmul %11, %12, %cst_9 {dimension_numbers = #tpu.dot_dimension_numbers<[1], [0], [0], [1], [0, 0, 1, 1], [], []>} : vector<8x64xf32>, vector<64x64xf32>, vector<8x64xf32> -> vector<8x64xf32>
    %14 = arith.maximumf %11, %13 : vector<8x64xf32>
    %c64 = arith.constant 64 : index
    %c0_10 = arith.constant 0 : index
    %15 = vector.load %arg4[%c64, %c0_10] : memref<192x64xf32, #tpu.memory_space<vmem>>, vector<64x64xf32>
    %cst_11 = arith.constant dense<0.000000e+00> : vector<8x64xf32>
    %16 = tpu.matmul %14, %15, %cst_11 {dimension_numbers = #tpu.dot_dimension_numbers<[1], [0], [0], [1], [0, 0, 1, 1], [], []>} : vector<8x64xf32>, vector<64x64xf32>, vector<8x64xf32> -> vector<8x64xf32>
    %17 = arith.maximumf %14, %16 : vector<8x64xf32>
    %18 = arith.subf %11, %17 : vector<8x64xf32>
    %19 = math.exp %18 : vector<8x64xf32>
    %c128_12 = arith.constant 128 : index
    %c0_13 = arith.constant 0 : index
    %20 = vector.load %arg4[%c128_12, %c0_13] : memref<192x64xf32, #tpu.memory_space<vmem>>, vector<64x64xf32>
    %cst_14 = arith.constant dense<0.000000e+00> : vector<8x64xf32>
    %21 = tpu.matmul %19, %20, %cst_14 {dimension_numbers = #tpu.dot_dimension_numbers<[1], [0], [0], [1], [0, 0, 1, 1], [], []>} : vector<8x64xf32>, vector<64x64xf32>, vector<8x64xf32> -> vector<8x64xf32>
    %22 = tpu.reciprocal %21 : vector<8x64xf32> -> vector<8x64xf32>
    %23 = arith.mulf %19, %22 : vector<8x64xf32>
    %c0_15 = arith.constant 0 : index
    %c0_16 = arith.constant 0 : index
    %24 = vector.load %arg5[%c0_15, %c0_16] : memref<64x512xf32, #tpu.memory_space<vmem>>, vector<64x512xf32>
    %cst_17 = arith.constant dense<0.000000e+00> : vector<8x512xf32>
    %25 = tpu.matmul %23, %24, %cst_17 {dimension_numbers = #tpu.dot_dimension_numbers<[1], [0], [0], [1], [0, 0, 1, 1], [], []>} : vector<8x64xf32>, vector<64x512xf32>, vector<8x512xf32> -> vector<8x512xf32>
    %26 = arith.mulf %25, %8 : vector<8x512xf32>
    %c0_18 = arith.constant 0 : index
    %c0_19 = arith.constant 0 : index
    %27 = vector.load %arg6[%c0_18, %c0_19] : memref<643x128xf32, #tpu.memory_space<vmem>>, vector<512x128xf32>
    %cst_20 = arith.constant dense<0.000000e+00> : vector<8x128xf32>
    %28 = tpu.matmul %26, %27, %cst_20 {dimension_numbers = #tpu.dot_dimension_numbers<[1], [0], [0], [1], [0, 0, 1, 1], [], []>} : vector<8x512xf32>, vector<512x128xf32>, vector<8x128xf32> -> vector<8x128xf32>
    %c640 = arith.constant 640 : index
    %c0_21 = arith.constant 0 : index
    %29 = vector.load %arg6[%c640, %c0_21] : memref<643x128xf32, #tpu.memory_space<vmem>>, vector<1x128xf32>
    %30 = vector.broadcast %29 : vector<1x128xf32> to vector<8x128xf32>
    %31 = arith.addf %28, %30 : vector<8x128xf32>
    %c512 = arith.constant 512 : index
    %c0_22 = arith.constant 0 : index
    %32 = vector.load %arg6[%c512, %c0_22] : memref<643x128xf32, #tpu.memory_space<vmem>>, vector<128x128xf32>
    %cst_23 = arith.constant dense<0.000000e+00> : vector<8x128xf32>
    %33 = tpu.matmul %31, %32, %cst_23 {dimension_numbers = #tpu.dot_dimension_numbers<[1], [0], [0], [1], [0, 0, 1, 1], [], []>} : vector<8x128xf32>, vector<128x128xf32>, vector<8x128xf32> -> vector<8x128xf32>
    %34 = arith.subf %31, %33 : vector<8x128xf32>
    %35 = arith.mulf %34, %34 : vector<8x128xf32>
    %cst_24 = arith.constant dense<0.000000e+00> : vector<8x128xf32>
    %36 = tpu.matmul %35, %32, %cst_24 {dimension_numbers = #tpu.dot_dimension_numbers<[1], [0], [0], [1], [0, 0, 1, 1], [], []>} : vector<8x128xf32>, vector<128x128xf32>, vector<8x128xf32> -> vector<8x128xf32>
    %cst_25 = arith.constant 9.99999974E-6 : f32
    %37 = vector.broadcast %cst_25 : f32 to vector<8x128xf32>
    %38 = arith.addf %36, %37 : vector<8x128xf32>
    %39 = math.rsqrt %38 : vector<8x128xf32>
    %40 = arith.mulf %34, %39 : vector<8x128xf32>
    %c641 = arith.constant 641 : index
    %c0_26 = arith.constant 0 : index
    %41 = vector.load %arg6[%c641, %c0_26] : memref<643x128xf32, #tpu.memory_space<vmem>>, vector<1x128xf32>
    %42 = vector.broadcast %41 : vector<1x128xf32> to vector<8x128xf32>
    %43 = arith.mulf %40, %42 : vector<8x128xf32>
    %c642 = arith.constant 642 : index
    %c0_27 = arith.constant 0 : index
    %44 = vector.load %arg6[%c642, %c0_27] : memref<643x128xf32, #tpu.memory_space<vmem>>, vector<1x128xf32>
    %45 = vector.broadcast %44 : vector<1x128xf32> to vector<8x128xf32>
    %46 = arith.addf %43, %45 : vector<8x128xf32>
    %47 = arith.addf %0, %46 : vector<8x128xf32>
    %c0_28 = arith.constant 0 : index
    %c0_29 = arith.constant 0 : index
    %48 = vector.load %arg7[%c0_28, %c0_29] : memref<8x128xf32, #tpu.memory_space<vmem>>, vector<8x128xf32>
    tpu.vector_store %arg7[%c0_28, %c0_29], %47 {strides = array<i32>} : memref<8x128xf32, #tpu.memory_space<vmem>>, vector<8x128xf32>,
    return
  }
  func.func @transform_0(%arg0: i32) -> (i32, i32) {
    %c0_i32 = arith.constant 0 : i32
    %c0_i32_0 = arith.constant 0 : i32
    return %arg0, %c0_i32 : i32, i32
  }
  func.func @transform_1(%arg0: i32) -> (i32, i32) {
    %c0_i32 = arith.constant 0 : i32
    %c0_i32_0 = arith.constant 0 : i32
    %c0_i32_1 = arith.constant 0 : i32
    return %c0_i32, %c0_i32_0 : i32, i32
  }
  func.func @transform_2(%arg0: i32) -> (i32, i32) {
    %c0_i32 = arith.constant 0 : i32
    %c0_i32_0 = arith.constant 0 : i32
    %c0_i32_1 = arith.constant 0 : i32
    return %c0_i32, %c0_i32_0 : i32, i32
  }
  func.func @transform_3(%arg0: i32) -> (i32, i32) {
    %c0_i32 = arith.constant 0 : i32
    %c0_i32_0 = arith.constant 0 : i32
    %c0_i32_1 = arith.constant 0 : i32
    return %c0_i32, %c0_i32_0 : i32, i32
  }
  func.func @transform_4(%arg0: i32) -> (i32, i32) {
    %c0_i32 = arith.constant 0 : i32
    %c0_i32_0 = arith.constant 0 : i32
    %c0_i32_1 = arith.constant 0 : i32
    return %c0_i32, %c0_i32_0 : i32, i32
  }
  func.func @transform_5(%arg0: i32) -> (i32, i32) {
    %c0_i32 = arith.constant 0 : i32
    %c0_i32_0 = arith.constant 0 : i32
    %c0_i32_1 = arith.constant 0 : i32
    return %c0_i32, %c0_i32_0 : i32, i32
  }
  func.func @transform_6(%arg0: i32) -> (i32, i32) {
    %c0_i32 = arith.constant 0 : i32
    %c0_i32_0 = arith.constant 0 : i32
    return %arg0, %c0_i32 : i32, i32
  }
}

</mosaic_0001>

<bundles_post_ra>
// kernel: tpu_custom_call.1
= control target key start
LH: loop header
LB: loop body
LE: loop exit
PB: predicated region body
PF: predicated region fallthrough
CT: control target
= control target key end

     0   :  { %11 = vsyncpa [#allocation3], 0  ;;  %s3379_s0 = inlined_call_operand.vmem [shape: f32[8,128], index: 0, kind: input, shape index: {}]   ;;  %s3380_s1 = inlined_call_operand.hbm [shape: f32[129,1536], index: 1, kind: input, shape index: {}]   ;;  %s3381_s2 = inlined_call_operand.vmem [shape: f32[512,64], index: 2, kind: input, shape index: {}]   ;;  %s3382_s3 = inlined_call_operand.vmem [shape: f32[192,64], index: 3, kind: input, shape index: {}]   ;;  %s3383_s4 = inlined_call_operand.vmem [shape: f32[64,512], index: 4, kind: input, shape index: {}]   ;;  %s3384_s5 = inlined_call_operand.vmem [shape: f32[643,128], index: 5, kind: input, shape index: {}]   ;;  %s3385_s6 = inlined_call_operand.hbm [shape: f32[8,128], index: 6, kind: output, shape index: {}]  }
   0x1   :  { %12 = vsyncpa [#allocation4], 0  ;;  %s2597_s21 = smov [#allocation2]   ;;  %s2549_s25 = scalar_lea.hbm %s3380_s1, 26112 }
   0x2   :  { %s20_s22 = sshll.u32 %s2597_s21, 4  ;;  %p2550_p0 = scmp.ne.s32.totalorder %s3380_s1, %s2549_s25  ;;  %s21_s22 = int_to_ptr.vmem [resolvable:$true] %s20_s22 }
   0x3   :  { %p2553_p1 = scmp.lt.u32.totalorder %s2549_s25, %s3380_s1 }
   0x5   :  { %p2555_p2 = pnand %p2553_p1, %p2550_p0 }
   0x7   :  { %2558 = shalt.err (!%p2555_p2)
}
   0x8   :  { %s2559_s30 = scalar_lea.vmem %s21_s22, 26112  ;;  %p2564_p4 = scmp.lt.s32.totalorder %s21_s22, %s21_s22 }
   0x9   :  { %p2560_p3 = scmp.ne.s32.totalorder %s21_s22, %s2559_s30  ;;  %p2565_p5 = scmp.lt.s32.totalorder %s2559_s30, %s2559_s30 }
   0xb   :  { %p2566_p6 = por %p2565_p5, %p2564_p4 }
   0xd   :  { %p2567_p7 = pnand %p2566_p6, %p2560_p3 }
   0xf   :  { %2570 = shalt.err (!%p2567_p7)
}
  0x10   :  { %s2598_s7 = smov 1536   ;;  %s2599_s8 = smov 96  }
  0x11   :  { %26 = dma.hbm_to_vmem [thread:$0]  %s3380_s1, 26112, %s21_s22, [#allocation3], %s2598_s7, %s2598_s7, %s2599_s8  }
  0x12   :  { %2593 = dma.done.wait [#allocation3], 26112  }
  0x13   :  { %2594 = vsyncadd [#allocation3], 4294941184  ;;  %v2600_v0 = vmov 0.0   ;;  %v40_v1 = vld [vmem:[#allocation2 + $0x8] sm:$0xff]  ;;  %v42_v3 = vld [vmem:[#allocation2 + $0x18] sm:$0xff]  ;;  %vm2602_vm0 = vmmov 0  }
  0x14   :  { %363 = vmatprep.mubr.f32.mxu0 %v2600_v0  ;;  %434 = vmatprep.mubr.f32.mxu1 %v2600_v0  ;;  %v52_v2 = vld [vmem:[#allocation2 + $0x68] sm:$0xff]  ;;  %v54_v5 = vld [vmem:[#allocation2 + $0x78] sm:$0xff]  ;;  %v39_v6 = vld [vmem:[#allocation2] sm:$0xff]  ;;  %vm941_vm1 = vcmask 523264   ;;  %s2603_s17 = smov [#allocation5]  }
  0x15   :  { %v2099_v4 = vpack.c.bf16 %v52_v2, %v40_v1  ;;  %v51_v7 = vld [vmem:[#allocation2 + $0x60] sm:$0xff]  ;;  %v2131_v8 = vpack.c.bf16 %v54_v5, %v42_v3  ;;  %v41_v10 = vld [vmem:[#allocation2 + $0x10] sm:$0xff]  ;;  %v64_v12 = vld [vmem:[#allocation2 + $0xc8] sm:$0xff]  ;;  %s1754_s18 = sshll.u32 %s2603_s17, 4  ;;  %s1755_s18 = int_to_ptr.vmem [resolvable:$true] %s1754_s18 }
  0x16   :  { %v2101_v9 = vpack.c.bf16 %v51_v7, %v39_v6  ;;  %v53_v11 = vld [vmem:[#allocation2 + $0x70] sm:$0xff]  ;;  %v76_v14 = vld [vmem:[#allocation2 + $0x128] sm:$0xff]  ;;  %v66_v15 = vld [vmem:[#allocation2 + $0xd8] sm:$0xff]  ;;  %s2571_s21 = scalar_lea.vmem %s1755_s18, 128  ;;  %p2576_p9 = scmp.lt.s32.totalorder %s1755_s18, %s1755_s18 }
  0x17   :  { %2100 = vmatprep.subr.bf16.mxu0 %v2099_v4  ;;  %v2133_v13 = vpack.c.bf16 %v53_v11, %v41_v10  ;;  %v78_v16 = vld [vmem:[#allocation2 + $0x138] sm:$0xff]  ;;  %2132 = vmatprep.subr.bf16.mxu1 %v2131_v8  ;;  %v2103_v17 = vpack.c.bf16 %v76_v14, %v64_v12  ;;  %v63_v19 = vld [vmem:[#allocation2 + $0xc0] sm:$0xff]  ;;  %v65_v21 = vld [vmem:[#allocation2 + $0xd0] sm:$0xff]  ;;  %p2572_p8 = scmp.ne.s32.totalorder %s1755_s18, %s2571_s21  ;;  %p2577_p10 = scmp.lt.s32.totalorder %s2571_s21, %s2571_s21 }
  0x18   :  { %2102 = vmatpush1.bf16.msra.mxu0 %v2101_v9  ;;  %v2135_v18 = vpack.c.bf16 %v78_v16, %v66_v15  ;;  %v75_v20 = vld [vmem:[#allocation2 + $0x120] sm:$0xff]  ;;  %v77_v23 = vld [vmem:[#allocation2 + $0x130] sm:$0xff]  ;;  %v88_v24 = vld [vmem:[#allocation2 + $0x188] sm:$0xff] }
  0x19   :  { %2134 = vmatpush1.bf16.msra.mxu1 %v2133_v13  ;;  %v2105_v22 = vpack.c.bf16 %v75_v20, %v63_v19  ;;  %v100_v25 = vld [vmem:[#allocation2 + $0x1e8] sm:$0xff]  ;;  %2104 = vmatprep.subr.bf16.mxu0 %v2103_v17  ;;  %v2137_v26 = vpack.c.bf16 %v77_v23, %v65_v21  ;;  %v90_v28 = vld [vmem:[#allocation2 + $0x198] sm:$0xff]  ;;  %v87_v30 = vld [vmem:[#allocation2 + $0x180] sm:$0xff]  ;;  %p2578_p11 = por %p2577_p10, %p2576_p9 }
  0x1a   :  { %2136 = vmatprep.subr.bf16.mxu1 %v2135_v18  ;;  %v2107_v27 = vpack.c.bf16 %v100_v25, %v88_v24  ;;  %v102_v29 = vld [vmem:[#allocation2 + $0x1f8] sm:$0xff]  ;;  %v99_v32 = vld [vmem:[#allocation2 + $0x1e0] sm:$0xff]  ;;  %v89_v33 = vld [vmem:[#allocation2 + $0x190] sm:$0xff] }
  0x1b   :  { %v2139_v31 = vpack.c.bf16 %v102_v29, %v90_v28  ;;  %v101_v34 = vld [vmem:[#allocation2 + $0x1f0] sm:$0xff]  ;;  %v2109_v35 = vpack.c.bf16 %v99_v32, %v87_v30  ;;  %v112_v36 = vld [vmem:[#allocation2 + $0x248] sm:$0xff]  ;;  %v114_v38 = vld [vmem:[#allocation2 + $0x258] sm:$0xff]  ;;  %p2579_p12 = pnand %p2578_p11, %p2572_p8 }
  0x1c   :  { %2106 = vmatpush1.bf16.msra.mxu0 %v2105_v22  ;;  %v124_v37 = vld [vmem:[#allocation2 + $0x2a8] sm:$0xff]  ;;  %v2141_v39 = vpack.c.bf16 %v101_v34, %v89_v33  ;;  %v126_v41 = vld [vmem:[#allocation2 + $0x2b8] sm:$0xff]  ;;  %v111_v42 = vld [vmem:[#allocation2 + $0x240] sm:$0xff] }
  0x1d   :  { %2138 = vmatpush1.bf16.msra.mxu1 %v2137_v26  ;;  %2108 = vmatprep.subr.bf16.mxu0 %v2107_v27  ;;  %v2111_v40 = vpack.c.bf16 %v124_v37, %v112_v36  ;;  %v123_v43 = vld [vmem:[#allocation2 + $0x2a0] sm:$0xff]  ;;  %v2143_v44 = vpack.c.bf16 %v126_v41, %v114_v38  ;;  %v113_v45 = vld [vmem:[#allocation2 + $0x250] sm:$0xff]  ;;  %v136_v47 = vld [vmem:[#allocation2 + $0x308] sm:$0xff] }
  0x1e   :  { %2140 = vmatprep.subr.bf16.mxu1 %v2139_v31  ;;  %v125_v46 = vld [vmem:[#allocation2 + $0x2b0] sm:$0xff]  ;;  %v148_v48 = vld [vmem:[#allocation2 + $0x368] sm:$0xff]  ;;  %v138_v49 = vld [vmem:[#allocation2 + $0x318] sm:$0xff]  ;;  %v2113_v51 = vpack.c.bf16 %v123_v43, %v111_v42 }
  0x1f   :  { %v150_v50 = vld [vmem:[#allocation2 + $0x378] sm:$0xff]  ;;  %v2145_v52 = vpack.c.bf16 %v125_v46, %v113_v45  ;;  %v2115_v53 = vpack.c.bf16 %v148_v48, %v136_v47  ;;  %v135_v54 = vld [vmem:[#allocation2 + $0x300] sm:$0xff]  ;;  %v137_v56 = vld [vmem:[#allocation2 + $0x310] sm:$0xff] }
  0x20   :  { %2110 = vmatpush1.bf16.msra.mxu0 %v2109_v35  ;;  %v147_v55 = vld [vmem:[#allocation2 + $0x360] sm:$0xff]  ;;  %v2147_v57 = vpack.c.bf16 %v150_v50, %v138_v49  ;;  %v149_v58 = vld [vmem:[#allocation2 + $0x370] sm:$0xff]  ;;  %v160_v59 = vld [vmem:[#allocation2 + $0x3c8] sm:$0xff] }
  0x21   :  { %2142 = vmatpush1.bf16.msra.mxu1 %v2141_v39  ;;  %2112 = vmatprep.subr.bf16.mxu0 %v2111_v40  ;;  %v172_v60 = vld [vmem:[#allocation2 + $0x428] sm:$0xff]  ;;  %v162_v61 = vld [vmem:[#allocation2 + $0x3d8] sm:$0xff]  ;;  %v2117_v63 = vpack.c.bf16 %v147_v55, %v135_v54  ;;  %v2149_v1 = vpack.c.bf16 %v149_v58, %v137_v56  ;;  %v159_v3 = vld [vmem:[#allocation2 + $0x3c0] sm:$0xff] }
  0x22   :  { %2144 = vmatprep.subr.bf16.mxu1 %v2143_v44  ;;  %v174_v62 = vld [vmem:[#allocation2 + $0x438] sm:$0xff]  ;;  %v2119_v2 = vpack.c.bf16 %v172_v60, %v160_v59  ;;  %v171_v4 = vld [vmem:[#allocation2 + $0x420] sm:$0xff]  ;;  %v161_v5 = vld [vmem:[#allocation2 + $0x3d0] sm:$0xff] }
  0x23   :  { %v2151_v6 = vpack.c.bf16 %v174_v62, %v162_v61  ;;  %v173_v7 = vld [vmem:[#allocation2 + $0x430] sm:$0xff]  ;;  %v184_v8 = vld [vmem:[#allocation2 + $0x488] sm:$0xff]  ;;  %v186_v10 = vld [vmem:[#allocation2 + $0x498] sm:$0xff]  ;;  %v2121_v12 = vpack.c.bf16 %v171_v4, %v159_v3 }
  0x24   :  { %2114 = vmatpush1.bf16.msra.mxu0 %v2113_v51  ;;  %v196_v9 = vld [vmem:[#allocation2 + $0x4e8] sm:$0xff]  ;;  %v198_v11 = vld [vmem:[#allocation2 + $0x4f8] sm:$0xff]  ;;  %v2153_v13 = vpack.c.bf16 %v173_v7, %v161_v5  ;;  %v183_v15 = vld [vmem:[#allocation2 + $0x480] sm:$0xff] }
  0x25   :  { %2146 = vmatpush1.bf16.msra.mxu1 %v2145_v52  ;;  %2116 = vmatprep.subr.bf16.mxu0 %v2115_v53  ;;  %v2123_v14 = vpack.c.bf16 %v196_v9, %v184_v8  ;;  %v195_v16 = vld [vmem:[#allocation2 + $0x4e0] sm:$0xff]  ;;  %v185_v17 = vld [vmem:[#allocation2 + $0x490] sm:$0xff]  ;;  %v2155_v18 = vpack.c.bf16 %v198_v11, %v186_v10  ;;  %v208_v20 = vld [vmem:[#allocation2 + $0x548] sm:$0xff] }
  0x26   :  { %2148 = vmatprep.subr.bf16.mxu1 %v2147_v57  ;;  %v197_v19 = vld [vmem:[#allocation2 + $0x4f0] sm:$0xff]  ;;  %v220_v21 = vld [vmem:[#allocation2 + $0x5a8] sm:$0xff]  ;;  %v210_v22 = vld [vmem:[#allocation2 + $0x558] sm:$0xff]  ;;  %v2125_v24 = vpack.c.bf16 %v195_v16, %v183_v15 }
  0x27   :  { %v222_v23 = vld [vmem:[#allocation2 + $0x5b8] sm:$0xff]  ;;  %v2157_v25 = vpack.c.bf16 %v197_v19, %v185_v17  ;;  %v2127_v26 = vpack.c.bf16 %v220_v21, %v208_v20  ;;  %v207_v27 = vld [vmem:[#allocation2 + $0x540] sm:$0xff]  ;;  %v209_v29 = vld [vmem:[#allocation2 + $0x550] sm:$0xff] }
  0x28   :  { %2118 = vmatpush1.bf16.msra.mxu0 %v2117_v63  ;;  %v219_v28 = vld [vmem:[#allocation2 + $0x5a0] sm:$0xff]  ;;  %v2159_v30 = vpack.c.bf16 %v222_v23, %v210_v22  ;;  %v221_v31 = vld [vmem:[#allocation2 + $0x5b0] sm:$0xff]  ;;  %v44_v32 = vld [vmem:[#allocation2 + $0x28] sm:$0xff] }
  0x29   :  { %2150 = vmatpush1.bf16.msra.mxu1 %v2149_v1  ;;  %2120 = vmatprep.subr.bf16.mxu0 %v2119_v2  ;;  %v56_v33 = vld [vmem:[#allocation2 + $0x88] sm:$0xff]  ;;  %v46_v34 = vld [vmem:[#allocation2 + $0x38] sm:$0xff]  ;;  %v2129_v36 = vpack.c.bf16 %v219_v28, %v207_v27  ;;  %v2161_v37 = vpack.c.bf16 %v221_v31, %v209_v29  ;;  %v43_v39 = vld [vmem:[#allocation2 + $0x20] sm:$0xff] }
  0x2a   :  { %2152 = vmatprep.subr.bf16.mxu1 %v2151_v6  ;;  %v58_v35 = vld [vmem:[#allocation2 + $0x98] sm:$0xff]  ;;  %v2163_v38 = vpack.c.bf16 %v56_v33, %v44_v32  ;;  %v55_v40 = vld [vmem:[#allocation2 + $0x80] sm:$0xff]  ;;  %v45_v41 = vld [vmem:[#allocation2 + $0x30] sm:$0xff] }
  0x2b   :  { %v2195_v42 = vpack.c.bf16 %v58_v35, %v46_v34  ;;  %v57_v43 = vld [vmem:[#allocation2 + $0x90] sm:$0xff]  ;;  %v68_v44 = vld [vmem:[#allocation2 + $0xe8] sm:$0xff]  ;;  %v70_v46 = vld [vmem:[#allocation2 + $0xf8] sm:$0xff]  ;;  %v2165_v49 = vpack.c.bf16 %v55_v40, %v43_v39 }
  0x2c   :  { %2122 = vmatpush1.bf16.msra.mxu0 %v2121_v12  ;;  %v80_v45 = vld [vmem:[#allocation2 + $0x148] sm:$0xff]  ;;  %v82_v47 = vld [vmem:[#allocation2 + $0x158] sm:$0xff]  ;;  %v2656_v48 = vld [vmem:[%s3379_s0] sm:$0xff]  ;;  %v2197_v50 = vpack.c.bf16 %v57_v43, %v45_v41 }
  0x2d   :  { %2154 = vmatpush1.bf16.msra.mxu1 %v2153_v13  ;;  %2124 = vmatprep.subr.bf16.mxu0 %v2123_v14  ;;  %v2167_v51 = vpack.c.bf16 %v80_v45, %v68_v44  ;;  %v67_v52 = vld [vmem:[#allocation2 + $0xe0] sm:$0xff]  ;;  %v69_v54 = vld [vmem:[#allocation2 + $0xf0] sm:$0xff]  ;;  %v2199_v55 = vpack.c.bf16 %v82_v47, %v70_v46  ;;  %v92_v57 = vld [vmem:[#allocation2 + $0x1a8] sm:$0xff] }
  0x2e   :  { %2156 = vmatprep.subr.bf16.mxu1 %v2155_v18  ;;  %v79_v53 = vld [vmem:[#allocation2 + $0x140] sm:$0xff]  ;;  %v81_v56 = vld [vmem:[#allocation2 + $0x150] sm:$0xff]  ;;  %v104_v58 = vld [vmem:[#allocation2 + $0x208] sm:$0xff] }
  0x2f   :  { %v94_v59 = vld [vmem:[#allocation2 + $0x1b8] sm:$0xff]  ;;  %v2169_v61 = vpack.c.bf16 %v79_v53, %v67_v52  ;;  %v2201_v62 = vpack.c.bf16 %v81_v56, %v69_v54  ;;  %v2171_v63 = vpack.c.bf16 %v104_v58, %v92_v57  ;;  %v91_v1 = vld [vmem:[#allocation2 + $0x1a0] sm:$0xff]  ;;  %v93_v3 = vld [vmem:[#allocation2 + $0x1b0] sm:$0xff] }
  0x30   :  { %2126 = vmatpush1.bf16.msra.mxu0 %v2125_v24  ;;  %v106_v60 = vld [vmem:[#allocation2 + $0x218] sm:$0xff]  ;;  %v103_v2 = vld [vmem:[#allocation2 + $0x200] sm:$0xff]  ;;  %v105_v5 = vld [vmem:[#allocation2 + $0x210] sm:$0xff] }
  0x31   :  { %2158 = vmatpush1.bf16.msra.mxu1 %v2157_v25  ;;  %2128 = vmatprep.subr.bf16.mxu0 %v2127_v26  ;;  %v2203_v4 = vpack.c.bf16 %v106_v60, %v94_v59  ;;  %v116_v6 = vld [vmem:[#allocation2 + $0x268] sm:$0xff]  ;;  %v118_v8 = vld [vmem:[#allocation2 + $0x278] sm:$0xff]  ;;  %v2173_v10 = vpack.c.bf16 %v103_v2, %v91_v1  ;;  %v2205_v11 = vpack.c.bf16 %v105_v5, %v93_v3  ;;  %v115_v13 = vld [vmem:[#allocation2 + $0x260] sm:$0xff] }
  0x32   :  { %2160 = vmatprep.subr.bf16.mxu1 %v2159_v30  ;;  %v128_v7 = vld [vmem:[#allocation2 + $0x2c8] sm:$0xff]  ;;  %v130_v9 = vld [vmem:[#allocation2 + $0x2d8] sm:$0xff]  ;;  %v127_v14 = vld [vmem:[#allocation2 + $0x2c0] sm:$0xff] }
  0x33   :  { %v2175_v12 = vpack.c.bf16 %v128_v7, %v116_v6  ;;  %v117_v15 = vld [vmem:[#allocation2 + $0x270] sm:$0xff]  ;;  %v2207_v16 = vpack.c.bf16 %v130_v9, %v118_v8  ;;  %v140_v18 = vld [vmem:[#allocation2 + $0x328] sm:$0xff]  ;;  %v142_v20 = vld [vmem:[#allocation2 + $0x338] sm:$0xff]  ;;  %v2177_v22 = vpack.c.bf16 %v127_v14, %v115_v13 }
  0x34   :  { %2130 = vmatpush1.bf16.msra.mxu0 %v2129_v36  ;;  %v129_v17 = vld [vmem:[#allocation2 + $0x2d0] sm:$0xff]  ;;  %v152_v19 = vld [vmem:[#allocation2 + $0x388] sm:$0xff]  ;;  %v154_v21 = vld [vmem:[#allocation2 + $0x398] sm:$0xff] }
  0x35   :  { %2162 = vmatpush1.bf16.msra.mxu1 %v2161_v37  ;;  %2164 = vmatprep.subr.bf16.mxu0 %v2163_v38  ;;  %v2209_v23 = vpack.c.bf16 %v129_v17, %v117_v15  ;;  %v2179_v24 = vpack.c.bf16 %v152_v19, %v140_v18  ;;  %v139_v25 = vld [vmem:[#allocation2 + $0x320] sm:$0xff]  ;;  %v141_v27 = vld [vmem:[#allocation2 + $0x330] sm:$0xff]  ;;  %v2211_v28 = vpack.c.bf16 %v154_v21, %v142_v20  ;;  %v164_v30 = vld [vmem:[#allocation2 + $0x3e8] sm:$0xff] }
  0x36   :  { %2196 = vmatprep.subr.bf16.mxu1 %v2195_v42  ;;  %v151_v26 = vld [vmem:[#allocation2 + $0x380] sm:$0xff]  ;;  %v153_v29 = vld [vmem:[#allocation2 + $0x390] sm:$0xff]  ;;  %v176_v31 = vld [vmem:[#allocation2 + $0x448] sm:$0xff] }
  0x37   :  { %364 = vmatmul.mubr.f32.vlgmr.msra.gmra.mrb[0].mxu0 %v2656_v48  ;;  %v166_v32 = vld [vmem:[#allocation2 + $0x3f8] sm:$0xff]  ;;  %v2181_v34 = vpack.c.bf16 %v151_v26, %v139_v25  ;;  %v2213_v35 = vpack.c.bf16 %v153_v29, %v141_v27  ;;  %v2183_v36 = vpack.c.bf16 %v176_v31, %v164_v30  ;;  %v163_v37 = vld [vmem:[#allocation2 + $0x3e0] sm:$0xff]  ;;  %v165_v39 = vld [vmem:[#allocation2 + $0x3f0] sm:$0xff] }
  0x38   :  { %435 = vmatmul.mubr.f32.vlgmr.msra.gmra.mrb[0].mxu1 %v2656_v48  ;;  %2166 = vmatpush1.bf16.msra.mxu0 %v2165_v49  ;;  %v178_v33 = vld [vmem:[#allocation2 + $0x458] sm:$0xff]  ;;  %v175_v38 = vld [vmem:[#allocation2 + $0x440] sm:$0xff]  ;;  %v177_v41 = vld [vmem:[#allocation2 + $0x450] sm:$0xff] }
  0x39   :  { %2198 = vmatpush1.bf16.msra.mxu1 %v2197_v50  ;;  %2168 = vmatprep.subr.bf16.mxu0 %v2167_v51  ;;  %v2215_v40 = vpack.c.bf16 %v178_v33, %v166_v32  ;;  %v188_v42 = vld [vmem:[#allocation2 + $0x4a8] sm:$0xff]  ;;  %v190_v44 = vld [vmem:[#allocation2 + $0x4b8] sm:$0xff]  ;;  %v2185_v46 = vpack.c.bf16 %v175_v38, %v163_v37  ;;  %v2217_v47 = vpack.c.bf16 %v177_v41, %v165_v39  ;;  %v187_v50 = vld [vmem:[#allocation2 + $0x4a0] sm:$0xff] }
  0x3a   :  { %2200 = vmatprep.subr.bf16.mxu1 %v2199_v55  ;;  %505 = vmatprep.mubr.f32.mxu0 %v2600_v0  ;;  %v200_v43 = vld [vmem:[#allocation2 + $0x508] sm:$0xff]  ;;  %v202_v45 = vld [vmem:[#allocation2 + $0x518] sm:$0xff]  ;;  %v199_v51 = vld [vmem:[#allocation2 + $0x500] sm:$0xff] }
  0x3b   :  { %576 = vmatprep.mubr.f32.mxu1 %v2600_v0  ;;  %v2187_v49 = vpack.c.bf16 %v200_v43, %v188_v42  ;;  %v189_v52 = vld [vmem:[#allocation2 + $0x4b0] sm:$0xff]  ;;  %v2219_v53 = vpack.c.bf16 %v202_v45, %v190_v44  ;;  %v212_v55 = vld [vmem:[#allocation2 + $0x568] sm:$0xff]  ;;  %v214_v57 = vld [vmem:[#allocation2 + $0x578] sm:$0xff]  ;;  %v2189_v59 = vpack.c.bf16 %v199_v51, %v187_v50 }
  0x3c   :  { %2170 = vmatpush1.bf16.msra.mxu0 %v2169_v61  ;;  %v201_v54 = vld [vmem:[#allocation2 + $0x510] sm:$0xff]  ;;  %v224_v56 = vld [vmem:[#allocation2 + $0x5c8] sm:$0xff]  ;;  %v226_v58 = vld [vmem:[#allocation2 + $0x5d8] sm:$0xff] }
  0x3d   :  { %2202 = vmatpush1.bf16.msra.mxu1 %v2201_v62  ;;  %2172 = vmatprep.subr.bf16.mxu0 %v2171_v63  ;;  %v2221_v60 = vpack.c.bf16 %v201_v54, %v189_v52  ;;  %v2191_v61 = vpack.c.bf16 %v224_v56, %v212_v55  ;;  %v211_v62 = vld [vmem:[#allocation2 + $0x560] sm:$0xff]  ;;  %v213_v1 = vld [vmem:[#allocation2 + $0x570] sm:$0xff]  ;;  %v2223_v2 = vpack.c.bf16 %v226_v58, %v214_v57  ;;  %v60_v5 = vld [vmem:[#allocation2 + $0xa8] sm:$0xff] }
  0x3e   :  { %2204 = vmatprep.subr.bf16.mxu1 %v2203_v4  ;;  %v223_v63 = vld [vmem:[#allocation2 + $0x5c0] sm:$0xff]  ;;  %v225_v3 = vld [vmem:[#allocation2 + $0x5d0] sm:$0xff]  ;;  %v48_v4 = vld [vmem:[#allocation2 + $0x48] sm:$0xff] }
  0x3f   :  { %v50_v6 = vld [vmem:[#allocation2 + $0x58] sm:$0xff]  ;;  %v2193_v8 = vpack.c.bf16 %v223_v63, %v211_v62  ;;  %v2225_v9 = vpack.c.bf16 %v225_v3, %v213_v1  ;;  %v49_v13 = vld [vmem:[#allocation2 + $0x50] sm:$0xff]  ;;  %v84_v17 = vld [vmem:[#allocation2 + $0x168] sm:$0xff] }
  0x40   :  { %2174 = vmatpush1.bf16.msra.mxu0 %v2173_v10  ;;  %v62_v7 = vld [vmem:[#allocation2 + $0xb8] sm:$0xff]  ;;  %v2227_v10 = vpack.c.bf16 %v60_v5, %v48_v4  ;;  %v61_v15 = vld [vmem:[#allocation2 + $0xb0] sm:$0xff]  ;;  %v108_v29 = vld [vmem:[#allocation2 + $0x228] sm:$0xff] }
  0x41   :  { %2206 = vmatpush1.bf16.msra.mxu1 %v2205_v11  ;;  %2176 = vmatprep.subr.bf16.mxu0 %v2175_v12  ;;  %v47_v11 = vld [vmem:[#allocation2 + $0x40] sm:$0xff]  ;;  %v2259_v14 = vpack.c.bf16 %v62_v7, %v50_v6  ;;  %v74_v18 = vld [vmem:[#allocation2 + $0x118] sm:$0xff]  ;;  %v2261_v21 = vpack.c.bf16 %v61_v15, %v49_v13  ;;  %v73_v25 = vld [vmem:[#allocation2 + $0x110] sm:$0xff] }
  0x42   :  { %2208 = vmatprep.subr.bf16.mxu1 %v2207_v16  ;;  %v59_v12 = vld [vmem:[#allocation2 + $0xa0] sm:$0xff]  ;;  %v72_v16 = vld [vmem:[#allocation2 + $0x108] sm:$0xff]  ;;  %v86_v19 = vld [vmem:[#allocation2 + $0x178] sm:$0xff] }
  0x43   :  { %v2229_v20 = vpack.c.bf16 %v59_v12, %v47_v11  ;;  %v2263_v26 = vpack.c.bf16 %v86_v19, %v74_v18  ;;  %v85_v27 = vld [vmem:[#allocation2 + $0x170] sm:$0xff]  ;;  %v98_v30 = vld [vmem:[#allocation2 + $0x1d8] sm:$0xff]  ;;  %v132_v41 = vld [vmem:[#allocation2 + $0x2e8] sm:$0xff] }
  0x44   :  { %2178 = vmatpush1.bf16.msra.mxu0 %v2177_v22  ;;  %v2231_v22 = vpack.c.bf16 %v84_v17, %v72_v16  ;;  %v110_v31 = vld [vmem:[#allocation2 + $0x238] sm:$0xff]  ;;  %v2265_v33 = vpack.c.bf16 %v85_v27, %v73_v25  ;;  %v97_v37 = vld [vmem:[#allocation2 + $0x1d0] sm:$0xff]  ;;  %v156_v54 = vld [vmem:[#allocation2 + $0x3a8] sm:$0xff] }
  0x45   :  { %2210 = vmatpush1.bf16.msra.mxu1 %v2209_v23  ;;  %2180 = vmatprep.subr.bf16.mxu0 %v2179_v24  ;;  %v71_v23 = vld [vmem:[#allocation2 + $0x100] sm:$0xff]  ;;  %v2267_v38 = vpack.c.bf16 %v110_v31, %v98_v30  ;;  %v109_v39 = vld [vmem:[#allocation2 + $0x230] sm:$0xff]  ;;  %v122_v42 = vld [vmem:[#allocation2 + $0x298] sm:$0xff] }
  0x46   :  { %2212 = vmatprep.subr.bf16.mxu1 %v2211_v28  ;;  %v83_v24 = vld [vmem:[#allocation2 + $0x160] sm:$0xff]  ;;  %v96_v28 = vld [vmem:[#allocation2 + $0x1c8] sm:$0xff]  ;;  %v134_v43 = vld [vmem:[#allocation2 + $0x2f8] sm:$0xff]  ;;  %v2269_v45 = vpack.c.bf16 %v109_v39, %v97_v37 }
  0x47   :  { %v2233_v32 = vpack.c.bf16 %v83_v24, %v71_v23  ;;  %v121_v50 = vld [vmem:[#allocation2 + $0x290] sm:$0xff]  ;;  %v2271_v51 = vpack.c.bf16 %v134_v43, %v122_v42  ;;  %v146_v55 = vld [vmem:[#allocation2 + $0x358] sm:$0xff]  ;;  %v180_v3 = vld [vmem:[#allocation2 + $0x468] sm:$0xff] }
  0x48   :  { %2182 = vmatpush1.bf16.msra.mxu0 %v2181_v34  ;;  %v2235_v34 = vpack.c.bf16 %v108_v29, %v96_v28  ;;  %v133_v52 = vld [vmem:[#allocation2 + $0x2f0] sm:$0xff]  ;;  %v158_v56 = vld [vmem:[#allocation2 + $0x3b8] sm:$0xff]  ;;  %v204_v15 = vld [vmem:[#allocation2 + $0x528] sm:$0xff] }
  0x49   :  { %2214 = vmatpush1.bf16.msra.mxu1 %v2213_v35  ;;  %2184 = vmatprep.subr.bf16.mxu0 %v2183_v36  ;;  %v95_v35 = vld [vmem:[#allocation2 + $0x1c0] sm:$0xff]  ;;  %v2273_v58 = vpack.c.bf16 %v133_v52, %v121_v50  ;;  %v145_v62 = vld [vmem:[#allocation2 + $0x350] sm:$0xff]  ;;  %v2275_v63 = vpack.c.bf16 %v158_v56, %v146_v55  ;;  %v170_v4 = vld [vmem:[#allocation2 + $0x418] sm:$0xff] }
  0x4a   :  { %2216 = vmatprep.subr.bf16.mxu1 %v2215_v40  ;;  %v107_v36 = vld [vmem:[#allocation2 + $0x220] sm:$0xff]  ;;  %v120_v40 = vld [vmem:[#allocation2 + $0x288] sm:$0xff]  ;;  %v157_v1 = vld [vmem:[#allocation2 + $0x3b0] sm:$0xff] }
  0x4b   :  { %v2237_v44 = vpack.c.bf16 %v107_v36, %v95_v35  ;;  %v182_v5 = vld [vmem:[#allocation2 + $0x478] sm:$0xff]  ;;  %v2277_v7 = vpack.c.bf16 %v157_v1, %v145_v62  ;;  %v169_v11 = vld [vmem:[#allocation2 + $0x410] sm:$0xff]  ;;  %v203_v23 = vld [vmem:[#allocation2 + $0x520] sm:$0xff] }
  0x4c   :  { %2186 = vmatpush1.bf16.msra.mxu0 %v2185_v46  ;;  %v2239_v46 = vpack.c.bf16 %v132_v41, %v120_v40  ;;  %v2279_v12 = vpack.c.bf16 %v182_v5, %v170_v4  ;;  %v181_v13 = vld [vmem:[#allocation2 + $0x470] sm:$0xff]  ;;  %v194_v16 = vld [vmem:[#allocation2 + $0x4d8] sm:$0xff]  ;;  %v216_v28 = vld [vmem:[#allocation2 + $0x588] sm:$0xff] }
  0x4d   :  { %2218 = vmatpush1.bf16.msra.mxu1 %v2217_v47  ;;  %2188 = vmatprep.subr.bf16.mxu0 %v2187_v49  ;;  %v119_v47 = vld [vmem:[#allocation2 + $0x280] sm:$0xff]  ;;  %v206_v17 = vld [vmem:[#allocation2 + $0x538] sm:$0xff]  ;;  %v2281_v19 = vpack.c.bf16 %v181_v13, %v169_v11  ;;  %v193_v24 = vld [vmem:[#allocation2 + $0x4d0] sm:$0xff] }
  0x4e   :  { %2220 = vmatprep.subr.bf16.mxu1 %v2219_v53  ;;  %v131_v49 = vld [vmem:[#allocation2 + $0x2e0] sm:$0xff]  ;;  %v144_v53 = vld [vmem:[#allocation2 + $0x348] sm:$0xff]  ;;  %v218_v30 = vld [vmem:[#allocation2 + $0x598] sm:$0xff] }
  0x4f   :  { %v2241_v57 = vpack.c.bf16 %v131_v49, %v119_v47  ;;  %v228_v29 = vld [vmem:[#allocation2 + $0x5e8] sm:$0xff]  ;;  %v217_v37 = vld [vmem:[#allocation2 + $0x590] sm:$0xff]  ;;  %v745_v39 = vld [vmem:[%s3381_s2 + $0x80] sm:$0xff] }
  0x50   :  { %2190 = vmatpush1.bf16.msra.mxu0 %v2189_v59  ;;  %v2243_v59 = vpack.c.bf16 %v156_v54, %v144_v53  ;;  %v2255_v31 = vpack.c.bf16 %v228_v29, %v216_v28  ;;  %v746_v41 = vld [vmem:[%s3381_s2 + $0x88] sm:$0xff]  ;;  %v777_v42 = vld [vmem:[%s3381_s2 + $0x180] sm:$0xff]  ;;  %v747_v52 = vld [vmem:[%s3381_s2 + $0x90] sm:$0xff] }
  0x51   :  { %2222 = vmatpush1.bf16.msra.mxu1 %v2221_v60  ;;  %2192 = vmatprep.subr.bf16.mxu0 %v2191_v61  ;;  %v143_v60 = vld [vmem:[#allocation2 + $0x340] sm:$0xff]  ;;  %v778_v43 = vld [vmem:[%s3381_s2 + $0x188] sm:$0xff]  ;;  %v748_v53 = vld [vmem:[%s3381_s2 + $0x98] sm:$0xff] }
  0x52   :  { %2224 = vmatprep.subr.bf16.mxu1 %v2223_v2  ;;  %v155_v61 = vld [vmem:[#allocation2 + $0x3a0] sm:$0xff]  ;;  %v168_v2 = vld [vmem:[#allocation2 + $0x408] sm:$0xff]  ;;  %v2295_v55 = vpack.c.bf16 %v748_v53, %v747_v52  ;;  %v779_v56 = vld [vmem:[%s3381_s2 + $0x190] sm:$0xff] }
  0x53   :  { %v2245_v6 = vpack.c.bf16 %v155_v61, %v143_v60  ;;  %v730_v47 = vld [vmem:[%s3381_s2 + $0x8] sm:$0xff]  ;;  %v761_v49 = vld [vmem:[%s3381_s2 + $0x100] sm:$0xff]  ;;  %v732_v60 = vld [vmem:[%s3381_s2 + $0x18] sm:$0xff] }
  0x54   :  { %2194 = vmatpush1.bf16.msra.mxu0 %v2193_v8  ;;  %v2247_v8 = vpack.c.bf16 %v180_v3, %v168_v2  ;;  %v763_v61 = vld [vmem:[%s3381_s2 + $0x110] sm:$0xff]  ;;  %v764_v62 = vld [vmem:[%s3381_s2 + $0x118] sm:$0xff]  ;;  %v749_v1 = vld [vmem:[%s3381_s2 + $0xa0] sm:$0xff] }
  0x55   :  { %2226 = vmatpush1.bf16.msra.mxu1 %v2225_v9  ;;  %2228 = vmatprep.subr.bf16.mxu0 %v2227_v10  ;;  %v167_v9 = vld [vmem:[#allocation2 + $0x400] sm:$0xff]  ;;  %v750_v2 = vld [vmem:[%s3381_s2 + $0xa8] sm:$0xff]  ;;  %v2329_v4 = vpack.c.bf16 %v764_v62, %v763_v61  ;;  %v751_v11 = vld [vmem:[%s3381_s2 + $0xb0] sm:$0xff] }
  0x56   :  { %2260 = vmatprep.subr.bf16.mxu1 %v2259_v14  ;;  %v179_v10 = vld [vmem:[#allocation2 + $0x460] sm:$0xff]  ;;  %v192_v14 = vld [vmem:[#allocation2 + $0x4c8] sm:$0xff]  ;;  %v2299_v5 = vpack.c.bf16 %v750_v2, %v749_v1  ;;  %v783_v13 = vld [vmem:[%s3381_s2 + $0x1b0] sm:$0xff] }
  0x57   :  { %506 = vmatmul.mubr.f32.vlgmr.msra.gmra.mrb[2].mxu0 %v2656_v48  ;;  %v2249_v18 = vpack.c.bf16 %v179_v10, %v167_v9  ;;  %v781_v3 = vld [vmem:[%s3381_s2 + $0x1a0] sm:$0xff]  ;;  %v766_v10 = vld [vmem:[%s3381_s2 + $0x128] sm:$0xff]  ;;  %v759_v62 = vld [vmem:[%s3381_s2 + $0xf0] sm:$0xff] }
  0x58   :  { %577 = vmatmul.mubr.f32.vlgmr.msra.gmra.mrb[2].mxu1 %v2656_v48  ;;  %2230 = vmatpush1.bf16.msra.mxu0 %v2229_v20  ;;  %v2251_v20 = vpack.c.bf16 %v204_v15, %v192_v14  ;;  %v765_v9 = vld [vmem:[%s3381_s2 + $0x120] sm:$0xff]  ;;  %v784_v14 = vld [vmem:[%s3381_s2 + $0x1b8] sm:$0xff]  ;;  %v791_v1 = vld [vmem:[%s3381_s2 + $0x1f0] sm:$0xff] }
  0x59   :  { %2262 = vmatpush1.bf16.msra.mxu1 %v2261_v21  ;;  %2232 = vmatprep.subr.bf16.mxu0 %v2231_v22  ;;  %v2283_v21 = vpack.c.bf16 %v206_v17, %v194_v16  ;;  %v191_v22 = vld [vmem:[#allocation2 + $0x4c0] sm:$0xff]  ;;  %v2333_v16 = vpack.c.bf16 %v766_v10, %v765_v9  ;;  %v2601_v10 = vmov 0.0|0.0  }
  0x5a   :  { %2264 = vmatprep.subr.bf16.mxu1 %v2263_v26  ;;  %647 = vmatprep.mubr.f32.mxu0 %v2600_v0  ;;  %v2253_v25 = vpack.c.bf16 %v203_v23, %v191_v22  ;;  %v205_v26 = vld [vmem:[#allocation2 + $0x530] sm:$0xff]  ;;  %v768_v22 = vld [vmem:[%s3381_s2 + $0x138] sm:$0xff]  ;;  %v753_v23 = vld [vmem:[%s3381_s2 + $0xc0] sm:$0xff] }
  0x5b   :  { %718 = vmatprep.mubr.f32.mxu1 %v2600_v0  ;;  %v2285_v27 = vpack.c.bf16 %v205_v26, %v193_v24  ;;  %v754_v24 = vld [vmem:[%s3381_s2 + $0xc8] sm:$0xff] }
  0x5c   :  { %2234 = vmatpush1.bf16.msra.mxu0 %v2233_v32  ;;  %v230_v32 = vld [vmem:[#allocation2 + $0x5f8] sm:$0xff]  ;;  %v786_v26 = vld [vmem:[%s3381_s2 + $0x1c8] sm:$0xff]  ;;  %v2307_v29 = vpack.c.bf16 %v754_v24, %v753_v23 }
  0x5d   :  { %2266 = vmatpush1.bf16.msra.mxu1 %v2265_v33  ;;  %2236 = vmatprep.subr.bf16.mxu0 %v2235_v34  ;;  %v215_v33 = vld [vmem:[#allocation2 + $0x580] sm:$0xff]  ;;  %v2287_v35 = vpack.c.bf16 %v230_v32, %v218_v30 }
  0x5e   :  { %2268 = vmatprep.subr.bf16.mxu1 %v2267_v38  ;;  %v227_v34 = vld [vmem:[#allocation2 + $0x5e0] sm:$0xff]  ;;  %v229_v38 = vld [vmem:[#allocation2 + $0x5f0] sm:$0xff] }
  0x5f   :  { %v2257_v36 = vpack.c.bf16 %v227_v34, %v215_v33  ;;  %v2289_v40 = vpack.c.bf16 %v229_v38, %v217_v37  ;;  %v737_v30 = vld [vmem:[%s3381_s2 + $0x40] sm:$0xff]  ;;  %v770_v34 = vld [vmem:[%s3381_s2 + $0x148] sm:$0xff]  ;;  %v787_v37 = vld [vmem:[%s3381_s2 + $0x1d0] sm:$0xff] }
  0x60   :  { %2238 = vmatpush1.bf16.msra.mxu0 %v2237_v44  ;;  %v2291_v44 = vpack.c.bf16 %v746_v41, %v745_v39  ;;  %v769_v32 = vld [vmem:[%s3381_s2 + $0x140] sm:$0xff]  ;;  %v788_v38 = vld [vmem:[%s3381_s2 + $0x1d8] sm:$0xff] }
  0x61   :  { %2270 = vmatpush1.bf16.msra.mxu1 %v2269_v45  ;;  %2240 = vmatprep.subr.bf16.mxu0 %v2239_v46  ;;  %v2323_v45 = vpack.c.bf16 %v778_v43, %v777_v42  ;;  %v729_v46 = vld [vmem:[%s3381_s2] sm:$0xff]  ;;  %v739_v42 = vld [vmem:[%s3381_s2 + $0x50] sm:$0xff]  ;;  %v740_v43 = vld [vmem:[%s3381_s2 + $0x58] sm:$0xff] }
  0x62   :  { %2272 = vmatprep.subr.bf16.mxu1 %v2271_v51  ;;  %v2293_v50 = vpack.c.bf16 %v730_v47, %v729_v46  ;;  %v762_v51 = vld [vmem:[%s3381_s2 + $0x108] sm:$0xff]  ;;  %v772_v46 = vld [vmem:[%s3381_s2 + $0x158] sm:$0xff]  ;;  %v757_v47 = vld [vmem:[%s3381_s2 + $0xe0] sm:$0xff]  ;;  %v2313_v52 = vpack.c.bf16 %v740_v43, %v739_v42 }
  0x63   :  { %v2325_v54 = vpack.c.bf16 %v762_v51, %v761_v49  ;;  %v758_v49 = vld [vmem:[%s3381_s2 + $0xe8] sm:$0xff] }
  0x64   :  { %2242 = vmatpush1.bf16.msra.mxu0 %v2241_v57  ;;  %v780_v57 = vld [vmem:[%s3381_s2 + $0x198] sm:$0xff]  ;;  %v790_v51 = vld [vmem:[%s3381_s2 + $0x1e8] sm:$0xff] }
  0x65   :  { %2274 = vmatpush1.bf16.msra.mxu1 %v2273_v58  ;;  %2244 = vmatprep.subr.bf16.mxu0 %v2243_v59  ;;  %v731_v58 = vld [vmem:[%s3381_s2 + $0x10] sm:$0xff]  ;;  %v2327_v59 = vpack.c.bf16 %v780_v57, %v779_v56  ;;  %v741_v56 = vld [vmem:[%s3381_s2 + $0x60] sm:$0xff]  ;;  %v742_v57 = vld [vmem:[%s3381_s2 + $0x68] sm:$0xff] }
  0x66   :  { %2276 = vmatprep.subr.bf16.mxu1 %v2275_v63  ;;  %v2297_v63 = vpack.c.bf16 %v732_v60, %v731_v58  ;;  %v773_v58 = vld [vmem:[%s3381_s2 + $0x160] sm:$0xff]  ;;  %v774_v60 = vld [vmem:[%s3381_s2 + $0x168] sm:$0xff] }
  0x67   :  { %v2349_v61 = vpack.c.bf16 %v774_v60, %v773_v58  ;;  %v934_v42 = vld [vmem:[%s3382_s3 + $0x8] sm:$0xff] }
  0x68   :  { %2246 = vmatpush1.bf16.msra.mxu0 %v2245_v6  ;;  %v733_v6 = vld [vmem:[%s3381_s2 + $0x20] sm:$0xff]  ;;  %v938_v60 = vld [vmem:[%s3382_s3 + $0x28] sm:$0xff] }
  0x69   :  { %2278 = vmatpush1.bf16.msra.mxu1 %v2277_v7  ;;  %2248 = vmatprep.subr.bf16.mxu0 %v2247_v8  ;;  %v734_v7 = vld [vmem:[%s3381_s2 + $0x28] sm:$0xff] }
  0x6a   :  { %2280 = vmatprep.subr.bf16.mxu1 %v2279_v12  ;;  %v752_v12 = vld [vmem:[%s3381_s2 + $0xb8] sm:$0xff]  ;;  %v2301_v15 = vpack.c.bf16 %v734_v7, %v733_v6  ;;  %v775_v7 = vld [vmem:[%s3381_s2 + $0x170] sm:$0xff] }
  0x6b   :  { %v2303_v17 = vpack.c.bf16 %v752_v12, %v751_v11 }
  0x6c   :  { %2250 = vmatpush1.bf16.msra.mxu0 %v2249_v18  ;;  %v735_v18 = vld [vmem:[%s3381_s2 + $0x30] sm:$0xff] }
  0x6d   :  { %2282 = vmatpush1.bf16.msra.mxu1 %v2281_v19  ;;  %2252 = vmatprep.subr.bf16.mxu0 %v2251_v20  ;;  %v736_v19 = vld [vmem:[%s3381_s2 + $0x38] sm:$0xff]  ;;  %v767_v20 = vld [vmem:[%s3381_s2 + $0x130] sm:$0xff] }
  0x6e   :  { %2284 = vmatprep.subr.bf16.mxu1 %v2283_v21  ;;  %v2335_v21 = vpack.c.bf16 %v784_v14, %v783_v13  ;;  %v2337_v28 = vpack.c.bf16 %v768_v22, %v767_v20 }
  0x70   :  { %2254 = vmatpush1.bf16.msra.mxu0 %v2253_v25  ;;  %v785_v25 = vld [vmem:[%s3381_s2 + $0x1c0] sm:$0xff] }
  0x71   :  { %2286 = vmatpush1.bf16.msra.mxu1 %v2285_v27  ;;  %2256 = vmatprep.subr.bf16.mxu0 %v2255_v31  ;;  %v2305_v27 = vpack.c.bf16 %v736_v19, %v735_v18  ;;  %v738_v31 = vld [vmem:[%s3381_s2 + $0x48] sm:$0xff]  ;;  %v2339_v33 = vpack.c.bf16 %v786_v26, %v785_v25 }
  0x72   :  { %2288 = vmatprep.subr.bf16.mxu1 %v2287_v35  ;;  %v755_v35 = vld [vmem:[%s3381_s2 + $0xd0] sm:$0xff]  ;;  %v2309_v39 = vpack.c.bf16 %v738_v31, %v737_v30 }
  0x73   :  { %v233_v18 = vld [vmem:[#allocation2 + $0x600] ss:$8 sm:$0xf0] }
  0x74   :  { %2258 = vmatpush1.bf16.msra.mxu0 %v2257_v36  ;;  %v756_v36 = vld [vmem:[%s3381_s2 + $0xd8] sm:$0xff] }
  0x75   :  { %2290 = vmatpush1.bf16.msra.mxu1 %v2289_v40  ;;  %2292 = vmatprep.subr.bf16.mxu0 %v2291_v44  ;;  %v2341_v40 = vpack.c.bf16 %v770_v34, %v769_v32  ;;  %v2311_v41 = vpack.c.bf16 %v756_v36, %v755_v35  ;;  %v771_v44 = vld [vmem:[%s3381_s2 + $0x150] sm:$0xff] }
  0x76   :  { %2324 = vmatprep.subr.bf16.mxu1 %v2323_v45  ;;  %v2343_v45 = vpack.c.bf16 %v788_v38, %v787_v37  ;;  %v2345_v53 = vpack.c.bf16 %v772_v46, %v771_v44 }
  0x77   :  { %648 = vmatmul.mubr.f32.vlgmr.msra.gmra.mrb[4].mxu0 %v2656_v48 }
  0x78   :  { %719 = vmatmul.mubr.f32.vlgmr.msra.gmra.mrb[4].mxu1 %v2656_v48  ;;  %2294 = vmatpush3.bf16.msra.mxu0 %v2293_v50  ;;  %v782_v48 = vld [vmem:[%s3381_s2 + $0x1a8] sm:$0xff]  ;;  %v789_v50 = vld [vmem:[%s3381_s2 + $0x1e0] sm:$0xff] }
  0x79   :  { %2326 = vmatpush3.bf16.msra.mxu1 %v2325_v54  ;;  %2296 = vmatprep.subr.bf16.mxu0 %v2295_v55  ;;  %v2331_v8 = vpack.c.bf16 %v782_v48, %v781_v3  ;;  %v2315_v54 = vpack.c.bf16 %v758_v49, %v757_v47  ;;  %v2347_v55 = vpack.c.bf16 %v790_v51, %v789_v50  ;;  %v792_v3 = vld [vmem:[%s3381_s2 + $0x1f8] sm:$0xff] }
  0x7a   :  { %2328 = vmatprep.subr.bf16.mxu1 %v2327_v59  ;;  %v2317_v59 = vpack.c.bf16 %v742_v57, %v741_v56  ;;  %v2351_v48 = vpack.c.bf16 %v792_v3, %v791_v1  ;;  %v935_v56 = vld [vmem:[%s3382_s3 + $0x10] sm:$0xff]  ;;  %v936_v57 = vld [vmem:[%s3382_s3 + $0x18] sm:$0xff] }
  0x7b   :  { %v2359_v58 = vpack.c.bf16 %v936_v57, %v935_v56  ;;  %v939_v3 = vld [vmem:[%s3382_s3 + $0x30] sm:$0xff] }
  0x7c   :  { %2298 = vmatpush3.bf16.msra.mxu0 %v2297_v63  ;;  %v760_v63 = vld [vmem:[%s3381_s2 + $0xf8] sm:$0xff] }
  0x7d   :  { %2330 = vmatpush3.bf16.msra.mxu1 %v2329_v4  ;;  %2300 = vmatprep.subr.bf16.mxu0 %v2299_v5  ;;  %v2319_v2 = vpack.c.bf16 %v760_v63, %v759_v62  ;;  %v743_v4 = vld [vmem:[%s3381_s2 + $0x70] sm:$0xff]  ;;  %v744_v5 = vld [vmem:[%s3381_s2 + $0x78] sm:$0xff] }
  0x7e   :  { %2332 = vmatprep.subr.bf16.mxu1 %v2331_v8  ;;  %v2321_v6 = vpack.c.bf16 %v744_v5, %v743_v4  ;;  %v776_v8 = vld [vmem:[%s3381_s2 + $0x178] sm:$0xff] }
  0x7f   :  { %v2353_v9 = vpack.c.bf16 %v776_v8, %v775_v7  ;;  %v940_v4 = vld [vmem:[%s3382_s3 + $0x38] sm:$0xff]  ;;  %v1018_v7 = vld [vmem:[%s3382_s3 + $0x50] sm:$0xff] }
  0x80   :  { %2302 = vmatpush3.bf16.msra.mxu0 %v2301_v15  ;;  %v239_v15 = vlaneseq  ;;  %v2365_v5 = vpack.c.bf16 %v940_v4, %v939_v3 }
  0x81   :  { %2334 = vmatpush3.bf16.msra.mxu1 %v2333_v16  ;;  %2304 = vmatprep.subr.bf16.mxu0 %v2303_v17  ;;  %v232_v17 = vld [vmem:[#allocation2 + $0x600] ss:$8 sm:$0xf] }
  0x82   :  { %2336 = vmatprep.subr.bf16.mxu1 %v2335_v21  ;;  %v2862_v16 = vshrl.u32 %v239_v15, 7  ;;  %v234_v19 = vor.u32 %v233_v18, %v232_v17 }
  0x84   :  { %2306 = vmatpush3.bf16.msra.mxu0 %v2305_v27  ;;  %v241_v20 = vsub.s32 0, %v2862_v16  ;;  %v257_v21 = vsub.s32 4, %v2862_v16  ;;  %v249_v22 = vsub.s32 2, %v2862_v16  ;;  %v245_v23 = vsub.s32 1, %v2862_v16 }
  0x85   :  { %2338 = vmatpush3.bf16.msra.mxu1 %v2337_v28  ;;  %2308 = vmatprep.subr.bf16.mxu0 %v2307_v29  ;;  %v265_v24 = vsub.s32 6, %v2862_v16  ;;  %v261_v25 = vsub.s32 5, %v2862_v16  ;;  %v253_v26 = vsub.s32 3, %v2862_v16  ;;  %v269_v27 = vsub.s32 7, %v2862_v16 }
  0x86   :  { %2340 = vmatprep.subr.bf16.mxu1 %v2339_v33  ;;  %v242_v28 = vrot.slane %v234_v19, %v241_v20  ;;  %v258_v29 = vrot.slane %v234_v19, %v257_v21  ;;  %v250_v30 = vrot.slane %v234_v19, %v249_v22  ;;  %v246_v31 = vrot.slane %v234_v19, %v245_v23 }
  0x87   :  { %v266_v32 = vrot.slane %v234_v19, %v265_v24  ;;  %v262_v33 = vrot.slane %v234_v19, %v261_v25  ;;  %v254_v34 = vrot.slane %v234_v19, %v253_v26  ;;  %v270_v35 = vrot.slane %v234_v19, %v269_v27  ;;  %v1022_v27 = vld [vmem:[%s3382_s3 + $0x70] sm:$0xff] }
  0x88   :  { %2310 = vmatpush3.bf16.msra.mxu0 %v2309_v39 }
  0x89   :  { %2342 = vmatpush3.bf16.msra.mxu1 %v2341_v40  ;;  %2312 = vmatprep.subr.bf16.mxu0 %v2311_v41  ;;  %v933_v41 = vld [vmem:[%s3382_s3] sm:$0xff] }
  0x8a   :  { %2344 = vmatprep.subr.bf16.mxu1 %v2343_v45 }
  0x8c   :  { %2314 = vmatpush3.bf16.msra.mxu0 %v2313_v52 }
  0x8d   :  { %2346 = vmatpush3.bf16.msra.mxu1 %v2345_v53  ;;  %2316 = vmatprep.subr.bf16.mxu0 %v2315_v54  ;;  %v2356_v54 = vpack.c.bf16 %v934_v42, %v933_v41  ;;  %v1107_v42 = vld [vmem:[%s3382_s3 + $0xb0] sm:$0xff] }
  0x8e   :  { %2348 = vmatprep.subr.bf16.mxu1 %v2347_v55 }
  0x90   :  { %2318 = vmatpush3.bf16.msra.mxu0 %v2317_v59  ;;  %v937_v59 = vld [vmem:[%s3382_s3 + $0x20] sm:$0xff] }
  0x91   :  { %2350 = vmatpush3.bf16.msra.mxu1 %v2349_v61  ;;  %2320 = vmatprep.subr.bf16.mxu0 %v2319_v2  ;;  %v2362_v61 = vpack.c.bf16 %v938_v60, %v937_v59  ;;  %v1186_v60 = vld [vmem:[%s3383_s4 + $0x10] sm:$0xff] }
  0x92   :  { %2352 = vmatprep.subr.bf16.mxu1 %v2351_v48  ;;  %v1016_v48 = vld [vmem:[%s3382_s3 + $0x40] sm:$0xff] }
  0x94   :  { %2322 = vmatpush3.bf16.msra.mxu0 %v2321_v6  ;;  %v1017_v6 = vld [vmem:[%s3382_s3 + $0x48] sm:$0xff] }
  0x95   :  { %2354 = vmatpush3.bf16.msra.mxu1 %v2353_v9  ;;  %2355 = vmatprep.subr.bf16.mxu0 %v2601_v10  ;;  %v2368_v8 = vpack.c.bf16 %v1017_v6, %v1016_v48  ;;  %v1019_v9 = vld [vmem:[%s3382_s3 + $0x58] sm:$0xff]  ;;  %v1197_v48 = vld [vmem:[%s3383_s4 + $0x68] sm:$0xff] }
  0x96   :  { %2367 = vmatprep.subr.bf16.mxu1 %v2601_v10  ;;  %v1195_v6 = vld [vmem:[%s3383_s4 + $0x58] sm:$0xff] }
 0x10a   :  { %v365_v11 = vpop.f32.mrb[0].mxu0 }
 0x10b   :  { %v436_v12 = vpop.f32.mrb[0].mxu1  ;;  %v367_v13 = vpop.f32.mrb[1].mxu0  ;;  %v366_v37 = vadd.f32 %v365_v11, %v242_v28  ;;  %v2371_v11 = vpack.c.bf16 %v1019_v9, %v1018_v7  ;;  %v1023_v28 = vld [vmem:[%s3382_s3 + $0x78] sm:$0xff]  ;;  %v1192_v9 = vld [vmem:[%s3383_s4 + $0x40] sm:$0xff] }
 0x10c   :  { %v438_v14 = vpop.f32.mrb[1].mxu1  ;;  %v437_v43 = vadd.f32 %v436_v12, %v250_v30  ;;  %v368_v44 = vadd.f32 %v367_v13, %v246_v31  ;;  %v1020_v12 = vld [vmem:[%s3382_s3 + $0x60] sm:$0xff]  ;;  %v1021_v13 = vld [vmem:[%s3382_s3 + $0x68] sm:$0xff] }
 0x10d   :  { %v439_v49 = vadd.f32 %v438_v14, %v254_v34  ;;  %v2374_v14 = vpack.c.bf16 %v1021_v13, %v1020_v12  ;;  %v1102_v34 = vld [vmem:[%s3382_s3 + $0x88] sm:$0xff] }
 0x12a   :  { %v507_v36 = vpop.f32.mrb[2].mxu0 }
 0x12b   :  { %v508_v38 = vadd.f32 %v507_v36, %v258_v29  ;;  %v578_v39 = vpop.f32.mrb[2].mxu1  ;;  %v509_v40 = vpop.f32.mrb[3].mxu0  ;;  %v2377_v29 = vpack.c.bf16 %v1023_v28, %v1022_v27  ;;  %v1103_v36 = vld [vmem:[%s3382_s3 + $0x90] sm:$0xff]  ;;  %v1200_v27 = vld [vmem:[%s3383_s4 + $0x80] sm:$0xff] }
 0x12c   :  { %v579_v45 = vadd.f32 %v578_v39, %v266_v32  ;;  %v510_v46 = vadd.f32 %v509_v40, %v262_v33  ;;  %v580_v47 = vpop.f32.mrb[3].mxu1  ;;  %v1101_v33 = vld [vmem:[%s3382_s3 + $0x80] sm:$0xff]  ;;  %v1106_v40 = vld [vmem:[%s3382_s3 + $0xa8] sm:$0xff] }
 0x12d   :  { %v725_v50 = vmul.f32 %v508_v38, %v366_v37  ;;  %v581_v51 = vadd.f32 %v580_v47, %v270_v35  ;;  %v2380_v35 = vpack.c.bf16 %v1102_v34, %v1101_v33  ;;  %v1104_v37 = vld [vmem:[%s3382_s3 + $0x98] sm:$0xff]  ;;  %v1105_v39 = vld [vmem:[%s3382_s3 + $0xa0] sm:$0xff]  ;;  %v1209_v34 = vld [vmem:[%s3383_s4 + $0xc8] sm:$0xff] }
 0x12e   :  { %v727_v52 = vmul.f32 %v579_v45, %v437_v43  ;;  %v726_v53 = vmul.f32 %v510_v46, %v368_v44  ;;  %v2383_v38 = vpack.c.bf16 %v1104_v37, %v1103_v36  ;;  %v2386_v41 = vpack.c.bf16 %v1106_v40, %v1105_v39  ;;  %v1108_v43 = vld [vmem:[%s3382_s3 + $0xb8] sm:$0xff]  ;;  %v1185_v45 = vld [vmem:[%s3383_s4 + $0x8] sm:$0xff]  ;;  %v1204_v28 = vld [vmem:[%s3383_s4 + $0xa0] sm:$0xff] }
 0x12f   :  { %v728_v55 = vmul.f32 %v581_v51, %v439_v49  ;;  %v2389_v44 = vpack.c.bf16 %v1108_v43, %v1107_v42  ;;  %v1189_v46 = vld [vmem:[%s3383_s4 + $0x28] sm:$0xff]  ;;  %v1187_v47 = vld [vmem:[%s3383_s4 + $0x18] sm:$0xff]  ;;  %v1184_v51 = vld [vmem:[%s3383_s4] sm:$0xff] }
 0x130   :  { %857 = vmatprep.mubr.f32.mxu0 %v726_v53  ;;  %v2391_v49 = vpack.c.bf16 %v1189_v46, %v1185_v45  ;;  %v1211_v36 = vld [vmem:[%s3383_s4 + $0xd8] sm:$0xff]  ;;  %v1208_v39 = vld [vmem:[%s3383_s4 + $0xc0] sm:$0xff]  ;;  %v1210_v43 = vld [vmem:[%s3383_s4 + $0xd0] sm:$0xff] }
 0x131   :  { %927 = vmatprep.mubr.f32.mxu1 %v728_v55  ;;  %858 = vmatmul.mubr.f32.vlgmr.msra.gmra.mrb[6].mxu0 %v725_v50  ;;  %v1191_v50 = vld [vmem:[%s3383_s4 + $0x38] sm:$0xff]  ;;  %v1212_v40 = vld [vmem:[%s3383_s4 + $0xe0] sm:$0xff] }
 0x132   :  { %928 = vmatmul.mubr.f32.vlgmr.msra.gmra.mrb[6].mxu1 %v727_v52  ;;  %2357 = vmatpush3.bf16.msra.mxu0 %v2356_v54  ;;  %v1188_v52 = vld [vmem:[%s3383_s4 + $0x20] sm:$0xff]  ;;  %v2407_v53 = vpack.c.bf16 %v1191_v50, %v1187_v47  ;;  %v2405_v42 = vpack.c.bf16 %v1212_v40, %v1208_v39  ;;  %v1382_v47 = vld [vmem:[%s3384_s5 + $0x88] sm:$0xff] }
 0x133   :  { %2358 = vmatprep.subr.bf16.mxu0 %v2601_v10  ;;  %1988 = vmatprep.mubr.msk.f32.mxu0 %vm2602_vm0, %v2600_v0  ;;  %v2393_v54 = vpack.c.bf16 %v1188_v52, %v1184_v51  ;;  %v1381_v46 = vld [vmem:[%s3384_s5 + $0x80] sm:$0xff]  ;;  %v1414_v51 = vld [vmem:[%s3384_s5 + $0x188] sm:$0xff] }
 0x134   :  { %2007 = vmatprep.mubr.msk.f32.mxu1 %vm2602_vm0, %v2600_v0  ;;  %2369 = vmatpush3.bf16.msra.mxu1 %v2368_v8  ;;  %v1199_v8 = vld [vmem:[%s3383_s4 + $0x78] sm:$0xff]  ;;  %v2423_v50 = vpack.c.bf16 %v1382_v47, %v1381_v46  ;;  %v1422_v46 = vld [vmem:[%s3384_s5 + $0x1c8] sm:$0xff] }
 0x135   :  { %2370 = vmatprep.subr.bf16.mxu1 %v2601_v10  ;;  %v2411_v12 = vpack.c.bf16 %v1199_v8, %v1195_v6  ;;  %v1368_v8 = vld [vmem:[%s3384_s5 + $0x18] sm:$0xff] }
 0x136   :  { %2360 = vmatpush3.bf16.msra.mxu0 %v2359_v58 }
 0x137   :  { %2361 = vmatprep.subr.bf16.mxu0 %v2601_v10 }
 0x138   :  { %2372 = vmatpush3.bf16.msra.mxu1 %v2371_v11  ;;  %v1196_v11 = vld [vmem:[%s3383_s4 + $0x60] sm:$0xff] }
 0x139   :  { %2373 = vmatprep.subr.bf16.mxu1 %v2601_v10  ;;  %v2397_v13 = vpack.c.bf16 %v1196_v11, %v1192_v9 }
 0x13a   :  { %2363 = vmatpush3.bf16.msra.mxu0 %v2362_v61  ;;  %v1190_v61 = vld [vmem:[%s3383_s4 + $0x30] sm:$0xff] }
 0x13b   :  { %2364 = vmatprep.subr.bf16.mxu0 %v2601_v10  ;;  %v2409_v3 = vpack.c.bf16 %v1190_v61, %v1186_v60  ;;  %v1384_v60 = vld [vmem:[%s3384_s5 + $0x98] sm:$0xff]  ;;  %v1415_v61 = vld [vmem:[%s3384_s5 + $0x190] sm:$0xff] }
 0x13c   :  { %2375 = vmatpush3.bf16.msra.mxu1 %v2374_v14  ;;  %v1194_v14 = vld [vmem:[%s3383_s4 + $0x50] sm:$0xff] }
 0x13d   :  { %2376 = vmatprep.subr.bf16.mxu1 %v2601_v10 }
 0x13e   :  { %2366 = vmatpush3.bf16.msra.mxu0 %v2365_v5  ;;  %v1193_v5 = vld [vmem:[%s3383_s4 + $0x48] sm:$0xff] }
 0x13f   :  { %2379 = vmatprep.subr.bf16.mxu0 %v2601_v10  ;;  %v2395_v7 = vpack.c.bf16 %v1197_v48, %v1193_v5 }
 0x140   :  { %2378 = vmatpush3.bf16.msra.mxu1 %v2377_v29 }
 0x141   :  { %2392 = vmatprep.subr.bf16.mxu1 %v2391_v49  ;;  %v1413_v49 = vld [vmem:[%s3384_s5 + $0x180] sm:$0xff] }
 0x142   :  { %v2455_v52 = vpack.c.bf16 %v1414_v51, %v1413_v49  ;;  %v1374_v51 = vld [vmem:[%s3384_s5 + $0x48] sm:$0xff] }
 0x14a   :  { %v2901_v62 = vpop.f32.mrb[4].mxu0 }
 0x14b   :  { %v2903_v63 = vpop.f32.mrb[4].mxu1  ;;  %v2905_v1 = vpop.f32.mrb[5].mxu0 }
 0x14c   :  { %v2907_v2 = vpop.f32.mrb[5].mxu1 }
 0x204   :  { %v1803_v15 = vpop.f32.mrb[6].mxu0 }
 0x205   :  { %v1838_v17 = vpop.f32.mrb[6].mxu1  ;;  %v1804_v18 = vpop.f32.mrb[7].mxu0 }
 0x206   :  { %v1805_v19 = vadd.f32 %v1804_v18, %v1803_v15  ;;  %v1839_v21 = vpop.f32.mrb[7].mxu1  ;;  %v1198_v15 = vld [vmem:[%s3383_s4 + $0x70] sm:$0xff]  ;;  %v1201_v18 = vld [vmem:[%s3383_s4 + $0x88] sm:$0xff] }
 0x207   :  { %v1840_v24 = vadd.f32 %v1839_v21, %v1838_v17  ;;  %v2413_v17 = vpack.c.bf16 %v1198_v15, %v1194_v14  ;;  %v1203_v21 = vld [vmem:[%s3383_s4 + $0x98] sm:$0xff]  ;;  %v1385_v15 = vld [vmem:[%s3384_s5 + $0xa0] sm:$0xff] }
 0x208   :  { %v1400_v14 = vld [vmem:[%s3384_s5 + $0x118] sm:$0xff] }
 0x209   :  { %v930_v25 = vadd.f32 %v1840_v24, %v1805_v19  ;;  %v1205_v19 = vld [vmem:[%s3383_s4 + $0xa8] sm:$0xff] }
 0x20a   :  { %v2399_v24 = vpack.c.bf16 %v1205_v19, %v1201_v18  ;;  %v1418_v18 = vld [vmem:[%s3384_s5 + $0x1a8] sm:$0xff] }
 0x20b   :  { %1989 = vmatmul.mubr.msk.f32.vlgmr.msra.gmra.mrb[8].mxu0 %vm941_vm1, %v930_v25 }
 0x20c   :  { %2026 = vmatprep.mubr.msk.f32.mxu0 %vm2602_vm0, %v2600_v0  ;;  %2381 = vmatpush3.bf16.msra.mxu0 %v2380_v35  ;;  %v1213_v35 = vld [vmem:[%s3383_s4 + $0xe8] sm:$0xff] }
 0x20d   :  { %2382 = vmatprep.subr.bf16.mxu0 %v2601_v10  ;;  %v2403_v37 = vpack.c.bf16 %v1213_v35, %v1209_v34  ;;  %v1420_v34 = vld [vmem:[%s3384_s5 + $0x1b8] sm:$0xff] }
 0x210   :  { %2384 = vmatpush3.bf16.msra.mxu0 %v2383_v38  ;;  %v1215_v38 = vld [vmem:[%s3383_s4 + $0xf8] sm:$0xff] }
 0x211   :  { %2385 = vmatprep.subr.bf16.mxu0 %v2601_v10 }
 0x214   :  { %2387 = vmatpush3.bf16.msra.mxu0 %v2386_v41  ;;  %v2419_v41 = vpack.c.bf16 %v1215_v38, %v1211_v36  ;;  %v1372_v38 = vld [vmem:[%s3384_s5 + $0x38] sm:$0xff] }
 0x215   :  { %2388 = vmatprep.subr.bf16.mxu0 %v2601_v10 }
 0x218   :  { %2390 = vmatpush3.bf16.msra.mxu0 %v2389_v44  ;;  %v1214_v44 = vld [vmem:[%s3383_s4 + $0xf0] sm:$0xff] }
 0x219   :  { %2408 = vmatprep.subr.bf16.mxu0 %v2407_v53  ;;  %v2421_v45 = vpack.c.bf16 %v1214_v44, %v1210_v43  ;;  %v1389_v43 = vld [vmem:[%s3384_s5 + $0xc0] sm:$0xff]  ;;  %v1390_v44 = vld [vmem:[%s3384_s5 + $0xc8] sm:$0xff] }
 0x2de   :  { %v1011_v30 = vpop.f32.mrb[8].mxu0 }
 0x2df   :  { %v1015_v31 = vmax.f32 %v930_v25, %v1011_v30  ;;  %v1990_v32 = vpop.f32.mrb[9].mxu0  ;;  %v2401_v30 = vpack.c.bf16 %v1204_v28, %v1200_v27 }
 0x2e0   :  { %v1206_v32 = vld [vmem:[%s3383_s4 + $0xb0] sm:$0xff] }
 0x2e1   :  { %2008 = vmatmul.mubr.msk.f32.vlgmr.msra.gmra.mrb[8].mxu1 %vm941_vm1, %v1015_v31 }
 0x2e2   :  { %1283 = vmatprep.mubr.f32.mxu1 %v2600_v0  ;;  %2394 = vmatpush1.bf16.msra.mxu1 %v2393_v54 }
 0x2e3   :  { %2396 = vmatprep.subr.bf16.mxu1 %v2395_v7  ;;  %v1367_v7 = vld [vmem:[%s3384_s5 + $0x10] sm:$0xff] }
 0x2e4   :  { %v2429_v19 = vpack.c.bf16 %v1368_v8, %v1367_v7  ;;  %v1407_v7 = vld [vmem:[%s3384_s5 + $0x150] sm:$0xff]  ;;  %v1408_v8 = vld [vmem:[%s3384_s5 + $0x158] sm:$0xff] }
 0x2e6   :  { %2398 = vmatpush1.bf16.msra.mxu1 %v2397_v13  ;;  %v1399_v13 = vld [vmem:[%s3384_s5 + $0x110] sm:$0xff] }
 0x2e7   :  { %2400 = vmatprep.subr.bf16.mxu1 %v2399_v24  ;;  %v1369_v24 = vld [vmem:[%s3384_s5 + $0x20] sm:$0xff] }
 0x2ea   :  { %2402 = vmatpush1.bf16.msra.mxu1 %v2401_v30  ;;  %v1402_v30 = vld [vmem:[%s3384_s5 + $0x128] sm:$0xff] }
 0x2eb   :  { %2404 = vmatprep.subr.bf16.mxu1 %v2403_v37  ;;  %v1371_v37 = vld [vmem:[%s3384_s5 + $0x30] sm:$0xff] }
 0x2ec   :  { %v2437_v47 = vpack.c.bf16 %v1372_v38, %v1371_v37  ;;  %v1411_v37 = vld [vmem:[%s3384_s5 + $0x170] sm:$0xff]  ;;  %v1412_v38 = vld [vmem:[%s3384_s5 + $0x178] sm:$0xff] }
 0x2ee   :  { %2406 = vmatpush1.bf16.msra.mxu1 %v2405_v42  ;;  %v1404_v42 = vld [vmem:[%s3384_s5 + $0x138] sm:$0xff] }
 0x2ef   :  { %2424 = vmatprep.subr.bf16.mxu1 %v2423_v50  ;;  %v1373_v50 = vld [vmem:[%s3384_s5 + $0x40] sm:$0xff] }
 0x3b4   :  { %v1093_v55 = vpop.f32.mrb[8].mxu1 }
 0x3b5   :  { %v1097_v56 = vmax.f32 %v1015_v31, %v1093_v55  ;;  %v2009_v57 = vpop.f32.mrb[9].mxu1  ;;  %v1202_v31 = vld [vmem:[%s3383_s4 + $0x90] sm:$0xff]  ;;  %v1365_v55 = vld [vmem:[%s3384_s5] sm:$0xff] }
 0x3b6   :  { %v2417_v33 = vpack.c.bf16 %v1206_v32, %v1202_v31  ;;  %v1397_v57 = vld [vmem:[%s3384_s5 + $0x100] sm:$0xff]  ;;  %v1387_v31 = vld [vmem:[%s3384_s5 + $0xb0] sm:$0xff]  ;;  %v1388_v32 = vld [vmem:[%s3384_s5 + $0xb8] sm:$0xff] }
 0x3b7   :  { %v1098_v58 = vsub.f32 %v930_v25, %v1097_v56  ;;  %v1207_v25 = vld [vmem:[%s3383_s4 + $0xb8] sm:$0xff]  ;;  %v1366_v56 = vld [vmem:[%s3384_s5 + $0x8] sm:$0xff]  ;;  %v2435_v39 = vpack.c.bf16 %v1388_v32, %v1387_v31 }
 0x3b8   :  { %v2415_v29 = vpack.c.bf16 %v1207_v25, %v1203_v21  ;;  %v2425_v48 = vpack.c.bf16 %v1366_v56, %v1365_v55  ;;  %v2461_v21 = vpack.c.bf16 %v1400_v14, %v1399_v13  ;;  %v1370_v25 = vld [vmem:[%s3384_s5 + $0x28] sm:$0xff]  ;;  %v1391_v56 = vld [vmem:[%s3384_s5 + $0xd0] sm:$0xff]  ;;  %v1428_v32 = vld [vmem:[%s3384_s5 + $0x1f8] sm:$0xff] }
 0x3b9   :  { %v1099_v59 = vmul.f32 1.442695, %v1098_v58  ;;  %v1398_v58 = vld [vmem:[%s3384_s5 + $0x108] sm:$0xff]  ;;  %v2433_v35 = vpack.c.bf16 %v1370_v25, %v1369_v24 }
 0x3ba   :  { %v2457_v6 = vpack.c.bf16 %v1398_v58, %v1397_v57  ;;  %v1406_v55 = vld [vmem:[%s3384_s5 + $0x148] sm:$0xff]  ;;  %v1392_v57 = vld [vmem:[%s3384_s5 + $0xd8] sm:$0xff]  ;;  %v1423_v58 = vld [vmem:[%s3384_s5 + $0x1d0] sm:$0xff] }
 0x3bb   :  { %2542 = vpow2.f32 %v1099_v59  ;;  %v1383_v59 = vld [vmem:[%s3384_s5 + $0x90] sm:$0xff]  ;;  %v1426_v13 = vld [vmem:[%s3384_s5 + $0x1e8] sm:$0xff] }
 0x3bc   :  { %v2427_v11 = vpack.c.bf16 %v1384_v60, %v1383_v59  ;;  %v1424_v59 = vld [vmem:[%s3384_s5 + $0x1d8] sm:$0xff]  ;;  %v2441_v60 = vpack.c.bf16 %v1374_v51, %v1373_v50  ;;  %v1410_v24 = vld [vmem:[%s3384_s5 + $0x168] sm:$0xff] }
 0x3c5   :  { %v3003_v4 = vpop.eup %2542 }
 0x3c6   :  { %2027 = vmatmul.mubr.msk.f32.vlgmr.msra.gmra.mrb[10].mxu0 %vm941_vm1, %v3003_v4 }
 0x3c7   :  { %2410 = vmatpush1.bf16.msra.mxu0 %v2409_v3  ;;  %1354 = vmatprep.mubr.f32.mxu0 %v2600_v0  ;;  %v1416_v3 = vld [vmem:[%s3384_s5 + $0x198] sm:$0xff] }
 0x3c8   :  { %2412 = vmatprep.subr.bf16.mxu0 %v2411_v12  ;;  %v2459_v12 = vpack.c.bf16 %v1416_v3, %v1415_v61  ;;  %v1375_v3 = vld [vmem:[%s3384_s5 + $0x50] sm:$0xff] }
 0x3cb   :  { %2414 = vmatpush1.bf16.msra.mxu0 %v2413_v17  ;;  %v1386_v17 = vld [vmem:[%s3384_s5 + $0xa8] sm:$0xff] }
 0x3cc   :  { %2416 = vmatprep.subr.bf16.mxu0 %v2415_v29  ;;  %v2431_v27 = vpack.c.bf16 %v1386_v17, %v1385_v15  ;;  %v1401_v29 = vld [vmem:[%s3384_s5 + $0x120] sm:$0xff]  ;;  %v2477_v15 = vpack.c.bf16 %v1408_v8, %v1407_v7  ;;  %v1587_v8 = vld [vmem:[%s3384_s5 + $0x268] sm:$0xff] }
 0x3cd   :  { %v2465_v36 = vpack.c.bf16 %v1402_v30, %v1401_v29  ;;  %v1377_v17 = vld [vmem:[%s3384_s5 + $0x60] sm:$0xff]  ;;  %v1396_v29 = vld [vmem:[%s3384_s5 + $0xf8] sm:$0xff]  ;;  %v1427_v30 = vld [vmem:[%s3384_s5 + $0x1f0] sm:$0xff] }
 0x3ce   :  { %v1586_v7 = vld [vmem:[%s3384_s5 + $0x260] sm:$0xff] }
 0x3cf   :  { %2418 = vmatpush1.bf16.msra.mxu0 %v2417_v33  ;;  %v1419_v33 = vld [vmem:[%s3384_s5 + $0x1b0] sm:$0xff] }
 0x3d0   :  { %2420 = vmatprep.subr.bf16.mxu0 %v2419_v41  ;;  %v2467_v40 = vpack.c.bf16 %v1420_v34, %v1419_v33  ;;  %v1403_v41 = vld [vmem:[%s3384_s5 + $0x130] sm:$0xff]  ;;  %v1380_v34 = vld [vmem:[%s3384_s5 + $0x78] sm:$0xff] }
 0x3d1   :  { %v2469_v49 = vpack.c.bf16 %v1404_v42, %v1403_v41  ;;  %v1379_v33 = vld [vmem:[%s3384_s5 + $0x70] sm:$0xff] }
 0x3d3   :  { %2422 = vmatpush1.bf16.msra.mxu0 %v2421_v45  ;;  %v1421_v45 = vld [vmem:[%s3384_s5 + $0x1c0] sm:$0xff] }
 0x3d4   :  { %2456 = vmatprep.subr.bf16.mxu0 %v2455_v52  ;;  %v2439_v52 = vpack.c.bf16 %v1390_v44, %v1389_v43 }
 0x499   :  { %v1178_v53 = vpop.f32.mrb[10].mxu0 }
 0x49a   :  { %2544 = vrcp.f32 %v1178_v53  ;;  %v2028_v54 = vpop.f32.mrb[11].mxu0  ;;  %v2471_v53 = vpack.c.bf16 %v1422_v46, %v1421_v45 }
 0x49b   :  { %v1405_v54 = vld [vmem:[%s3384_s5 + $0x140] sm:$0xff] }
 0x49c   :  { %v2473_v61 = vpack.c.bf16 %v1406_v55, %v1405_v54  ;;  %v1576_v54 = vld [vmem:[%s3384_s5 + $0x210] sm:$0xff]  ;;  %v1577_v55 = vld [vmem:[%s3384_s5 + $0x218] sm:$0xff] }
 0x4a4   :  { %v2545_v5 = vpop.eup %2544 }
 0x4a5   :  { %v1183_v9 = vmul.f32 %v2545_v5, %v3003_v4  ;;  %v1417_v4 = vld [vmem:[%s3384_s5 + $0x1a0] sm:$0xff]  ;;  %v1376_v5 = vld [vmem:[%s3384_s5 + $0x58] sm:$0xff] }
 0x4a6   :  { %v2463_v28 = vpack.c.bf16 %v1418_v18, %v1417_v4  ;;  %v2445_v14 = vpack.c.bf16 %v1376_v5, %v1375_v3  ;;  %v1584_v5 = vld [vmem:[%s3384_s5 + $0x250] sm:$0xff] }
 0x4a7   :  { %1766 = vmatmul.mubr.msk.f32.vlgmr.msra.gmra.mrb[10].mxu1 %vm941_vm1, %v1183_v9  ;;  %1767 = vmatmul.mubr.msk.f32.vlgmr.msra.gmra.mrb[12].mxu0 %vm941_vm1, %v1183_v9  ;;  %v1393_v9 = vld [vmem:[%s3384_s5 + $0xe0] sm:$0xff] }
 0x4a8   :  { %2426 = vmatpush3.bf16.msra.mxu1 %v2425_v48  ;;  %2458 = vmatpush3.bf16.msra.mxu0 %v2457_v6  ;;  %v2443_v48 = vpack.c.bf16 %v1392_v57, %v1391_v56  ;;  %v2475_v6 = vpack.c.bf16 %v1424_v59, %v1423_v58  ;;  %v1579_v56 = vld [vmem:[%s3384_s5 + $0x228] sm:$0xff]  ;;  %v1580_v58 = vld [vmem:[%s3384_s5 + $0x230] sm:$0xff]  ;;  %v1581_v59 = vld [vmem:[%s3384_s5 + $0x238] sm:$0xff] }
 0x4a9   :  { %2428 = vmatprep.subr.bf16.mxu1 %v2427_v11  ;;  %2460 = vmatprep.subr.bf16.mxu0 %v2459_v12  ;;  %v1394_v11 = vld [vmem:[%s3384_s5 + $0xe8] sm:$0xff]  ;;  %v1425_v12 = vld [vmem:[%s3384_s5 + $0x1e0] sm:$0xff] }
 0x4aa   :  { %v2447_v4 = vpack.c.bf16 %v1394_v11, %v1393_v9  ;;  %v2479_v18 = vpack.c.bf16 %v1426_v13, %v1425_v12  ;;  %v2506_v9 = vpack.c.bf16 %v1587_v8, %v1586_v7  ;;  %v1588_v11 = vld [vmem:[%s3384_s5 + $0x270] sm:$0xff]  ;;  %v1589_v12 = vld [vmem:[%s3384_s5 + $0x278] sm:$0xff] }
 0x4ab   :  { %v2509_v13 = vpack.c.bf16 %v1589_v12, %v1588_v11 }
 0x4ac   :  { %2430 = vmatpush3.bf16.msra.mxu1 %v2429_v19  ;;  %2462 = vmatpush3.bf16.msra.mxu0 %v2461_v21  ;;  %v1378_v19 = vld [vmem:[%s3384_s5 + $0x68] sm:$0xff]  ;;  %v1409_v21 = vld [vmem:[%s3384_s5 + $0x160] sm:$0xff] }
 0x4ad   :  { %2432 = vmatprep.subr.bf16.mxu1 %v2431_v27  ;;  %2464 = vmatprep.subr.bf16.mxu0 %v2463_v28  ;;  %v2449_v25 = vpack.c.bf16 %v1378_v19, %v1377_v17  ;;  %v2481_v27 = vpack.c.bf16 %v1410_v24, %v1409_v21  ;;  %v1395_v28 = vld [vmem:[%s3384_s5 + $0xf0] sm:$0xff]  ;;  %v1768_v17 = vld [vmem:[%s3384_s5 + $0x280] ss:$0 sm:$0xff] }
 0x4ae   :  { %v2451_v31 = vpack.c.bf16 %v1396_v29, %v1395_v28 }
 0x4b0   :  { %2434 = vmatpush3.bf16.msra.mxu1 %v2433_v35  ;;  %2466 = vmatpush3.bf16.msra.mxu0 %v2465_v36  ;;  %v2483_v35 = vpack.c.bf16 %v1428_v32, %v1427_v30  ;;  %v2453_v36 = vpack.c.bf16 %v1380_v34, %v1379_v33  ;;  %v1769_v34 = vld [vmem:[%s3384_s5 + $0x281] ss:$0 sm:$0xff] }
 0x4b1   :  { %2436 = vmatprep.subr.bf16.mxu1 %v2435_v39  ;;  %2468 = vmatprep.subr.bf16.mxu0 %v2467_v40  ;;  %v2485_v39 = vpack.c.bf16 %v1412_v38, %v1411_v37  ;;  %v236_v40 = vld [vmem:[#allocation2 + $0x640] ss:$8 sm:$0xf] }
 0x4b2   :  { %v274_v41 = vrot.slane %v236_v40, %v241_v20  ;;  %v282_v42 = vrot.slane %v236_v40, %v249_v22  ;;  %v278_v43 = vrot.slane %v236_v40, %v245_v23  ;;  %v286_v44 = vrot.slane %v236_v40, %v253_v26  ;;  %v1575_v20 = vld [vmem:[%s3384_s5 + $0x208] sm:$0xff] }
 0x4b4   :  { %2438 = vmatpush3.bf16.msra.mxu1 %v2437_v47  ;;  %2470 = vmatpush3.bf16.msra.mxu0 %v2469_v49  ;;  %v650_v45 = vadd.f32 %v2901_v62, %v274_v41  ;;  %v721_v46 = vadd.f32 %v2903_v63, %v282_v42  ;;  %v1574_v47 = vld [vmem:[%s3384_s5 + $0x200] sm:$0xff]  ;;  %v652_v22 = vadd.f32 %v2905_v1, %v278_v43 }
 0x4b5   :  { %2440 = vmatprep.subr.bf16.mxu1 %v2439_v52  ;;  %2472 = vmatprep.subr.bf16.mxu0 %v2471_v53  ;;  %v723_v49 = vadd.f32 %v2907_v2, %v286_v44  ;;  %v2488_v53 = vpack.c.bf16 %v1575_v20, %v1574_v47  ;;  %v2491_v1 = vpack.c.bf16 %v1577_v55, %v1576_v54  ;;  %v1578_v2 = vld [vmem:[%s3384_s5 + $0x220] sm:$0xff] }
 0x4b6   :  { %v2494_v57 = vpack.c.bf16 %v1579_v56, %v1578_v2 }
 0x4b8   :  { %2442 = vmatpush3.bf16.msra.mxu1 %v2441_v60  ;;  %2474 = vmatpush3.bf16.msra.mxu0 %v2473_v61  ;;  %v2497_v60 = vpack.c.bf16 %v1581_v59, %v1580_v58  ;;  %v1583_v61 = vld [vmem:[%s3384_s5 + $0x248] sm:$0xff] }
 0x4b9   :  { %2444 = vmatprep.subr.bf16.mxu1 %v2443_v48  ;;  %2476 = vmatprep.subr.bf16.mxu0 %v2475_v6  ;;  %v1585_v48 = vld [vmem:[%s3384_s5 + $0x258] sm:$0xff] }
 0x4ba   :  { %v2503_v6 = vpack.c.bf16 %v1585_v48, %v1584_v5 }
 0x4bc   :  { %2446 = vmatpush3.bf16.msra.mxu1 %v2445_v14  ;;  %2478 = vmatpush3.bf16.msra.mxu0 %v2477_v15 }
 0x4bd   :  { %2448 = vmatprep.subr.bf16.mxu1 %v2447_v4  ;;  %2480 = vmatprep.subr.bf16.mxu0 %v2479_v18 }
 0x4c0   :  { %2450 = vmatpush3.bf16.msra.mxu1 %v2449_v25  ;;  %2482 = vmatpush3.bf16.msra.mxu0 %v2481_v27 }
 0x4c1   :  { %2452 = vmatprep.subr.bf16.mxu1 %v2451_v31  ;;  %2484 = vmatprep.subr.bf16.mxu0 %v2483_v35 }
 0x4c4   :  { %2454 = vmatpush3.bf16.msra.mxu1 %v2453_v36  ;;  %2486 = vmatpush3.bf16.msra.mxu0 %v2485_v39  ;;  %v1770_v36 = vld [vmem:[%s3384_s5 + $0x282] ss:$0 sm:$0xff] }
 0x4c5   :  { %2487 = vmatprep.subr.bf16.mxu1 %v2601_v10  ;;  %2511 = vmatprep.subr.bf16.mxu0 %v2601_v10  ;;  %v2548_v39 = vld [vmem:[%s3379_s0] sm:$0xff] }
 0x57a   :  { %v1285_v23 = vpop.f32.mrb[10].mxu1  ;;  %v1356_v50 = vpop.f32.mrb[12].mxu0 }
 0x57b   :  { %v1361_v16 = vmul.f32 %v1285_v23, %v650_v45  ;;  %v1363_v26 = vmul.f32 %v1356_v50, %v721_v46  ;;  %v1287_v51 = vpop.f32.mrb[11].mxu1  ;;  %v1358_v62 = vpop.f32.mrb[13].mxu0 }
 0x57c   :  { %v1362_v52 = vmul.f32 %v1287_v51, %v652_v22  ;;  %v1364_v63 = vmul.f32 %v1358_v62, %v723_v49 }
 0x57e   :  { %1498 = vmatprep.mubr.f32.mxu1 %v1362_v52  ;;  %1568 = vmatprep.mubr.f32.mxu0 %v1364_v63 }
 0x57f   :  { %1499 = vmatmul.mubr.f32.vlgmr.msra.gmra.mrb[12].mxu1 %v1361_v16  ;;  %1569 = vmatmul.mubr.f32.vlgmr.msra.gmra.mrb[14].mxu0 %v1363_v26 }
 0x580   :  { %2489 = vmatpush3.bf16.msra.mxu1 %v2488_v53  ;;  %2061 = vmatprep.mubr.msk.f32.mxu1 %vm2602_vm0, %v2600_v0 }
 0x581   :  { %2490 = vmatprep.subr.bf16.mxu1 %v2601_v10  ;;  %2513 = vmatpush3.bf16.msra.mxu0 %v2488_v53 }
 0x582   :  { %2514 = vmatprep.subr.bf16.mxu0 %v2601_v10  ;;  %2096 = vmatprep.mubr.msk.f32.mxu0 %vm2602_vm0, %v2600_v0  ;;  %v1582_v0 = vld [vmem:[%s3384_s5 + $0x240] sm:$0xff] }
 0x583   :  { %v2500_v3 = vpack.c.bf16 %v1583_v61, %v1582_v0 }
 0x584   :  { %2492 = vmatpush3.bf16.msra.mxu1 %v2491_v1 }
 0x585   :  { %2493 = vmatprep.subr.bf16.mxu1 %v2601_v10  ;;  %2516 = vmatpush3.bf16.msra.mxu0 %v2491_v1 }
 0x586   :  { %2517 = vmatprep.subr.bf16.mxu0 %v2601_v10 }
 0x588   :  { %2495 = vmatpush3.bf16.msra.mxu1 %v2494_v57 }
 0x589   :  { %2496 = vmatprep.subr.bf16.mxu1 %v2601_v10  ;;  %2519 = vmatpush3.bf16.msra.mxu0 %v2494_v57 }
 0x58a   :  { %2520 = vmatprep.subr.bf16.mxu0 %v2601_v10 }
 0x58c   :  { %2498 = vmatpush3.bf16.msra.mxu1 %v2497_v60 }
 0x58d   :  { %2499 = vmatprep.subr.bf16.mxu1 %v2601_v10  ;;  %2522 = vmatpush3.bf16.msra.mxu0 %v2497_v60 }
 0x58e   :  { %2523 = vmatprep.subr.bf16.mxu0 %v2601_v10 }
 0x590   :  { %2501 = vmatpush3.bf16.msra.mxu1 %v2500_v3 }
 0x591   :  { %2502 = vmatprep.subr.bf16.mxu1 %v2601_v10  ;;  %2525 = vmatpush3.bf16.msra.mxu0 %v2500_v3 }
 0x592   :  { %2526 = vmatprep.subr.bf16.mxu0 %v2601_v10 }
 0x594   :  { %2504 = vmatpush3.bf16.msra.mxu1 %v2503_v6 }
 0x595   :  { %2505 = vmatprep.subr.bf16.mxu1 %v2601_v10  ;;  %2528 = vmatpush3.bf16.msra.mxu0 %v2503_v6 }
 0x596   :  { %2529 = vmatprep.subr.bf16.mxu0 %v2601_v10 }
 0x598   :  { %2507 = vmatpush3.bf16.msra.mxu1 %v2506_v9 }
 0x599   :  { %2531 = vmatpush3.bf16.msra.mxu0 %v2506_v9  ;;  %2508 = vmatprep.subr.bf16.mxu1 %v2601_v10 }
 0x59a   :  { %2532 = vmatprep.subr.bf16.mxu0 %v2601_v10 }
 0x59c   :  { %2510 = vmatpush3.bf16.msra.mxu1 %v2509_v13 }
 0x59d   :  { %2534 = vmatpush3.bf16.msra.mxu0 %v2509_v13 }
 0x652   :  { %v1900_v14 = vpop.f32.mrb[12].mxu1  ;;  %v1935_v15 = vpop.f32.mrb[14].mxu0 }
 0x653   :  { %v1901_v4 = vpop.f32.mrb[13].mxu1  ;;  %v1936_v18 = vpop.f32.mrb[15].mxu0 }
 0x654   :  { %v1902_v19 = vadd.f32 %v1901_v4, %v1900_v14  ;;  %v1937_v21 = vadd.f32 %v1936_v18, %v1935_v15 }
 0x656   :  { %v1501_v24 = vadd.f32 %v1902_v19, %v1768_v17 }
 0x658   :  { %v1571_v25 = vadd.f32 %v1937_v21, %v1501_v24 }
 0x65a   :  { %2062 = vmatmul.mubr.f32.vlgmr.msra.gmra.mrb[14].mxu1 %v1571_v25 }
 0x72d   :  { %v1656_v27 = vpop.f32.mrb[14].mxu1 }
 0x72e   :  { %v1660_v28 = vsub.f32 %v1571_v25, %v1656_v27  ;;  %v2063_v29 = vpop.f32.mrb[15].mxu1 }
 0x730   :  { %v1661_v10 = vmul.f32 %v1660_v28, %v1660_v28 }
 0x732   :  { %2097 = vmatmul.mubr.f32.vlgmr.msra.gmra.mrb[16].mxu0 %v1661_v10 }
 0x805   :  { %v1728_v30 = vpop.f32.mrb[16].mxu0 }
 0x806   :  { %v1729_v31 = vadd.f32 1e-05, %v1728_v30  ;;  %v2098_v32 = vpop.f32.mrb[17].mxu0 }
 0x808   :  { %2546 = vrsqrt.f32 %v1729_v31 }
 0x812   :  { %v2547_v33 = vpop.eup %2546 }
 0x813   :  { %v1733_v35 = vmul.f32 %v2547_v33, %v1660_v28 }
 0x815   :  { %v1739_v37 = vmul.f32 %v1769_v34, %v1733_v35 }
 0x817   :  { %v1745_v38 = vadd.f32 %v1770_v36, %v1739_v37 }
 0x819   :  { %v1746_v40 = vadd.f32 %v2548_v39, %v1745_v38 }
 0x81b   :  { %1747 = vst [vmem:[#allocation5] sm:$0xff] %v1746_v40 }
 0x81c   :  { %2582 = shalt.err (!%p2579_p12)
}
 0x81d   :  { %s2583_s23 = scalar_lea.hbm %s3385_s6, 128 }
 0x81e   :  { %p2584_p13 = scmp.ne.s32.totalorder %s3385_s6, %s2583_s23  ;;  %p2587_p0 = scmp.lt.u32.totalorder %s2583_s23, %s3385_s6 }
 0x820   :  { %p2589_p1 = pnand %p2587_p0, %p2584_p13 }
 0x822   :  { %2592 = shalt.err (!%p2589_p1)
}
 0x823   :  { %1757 = dma.vmem_to_hbm [thread:$0]  %s1755_s18, 128, %s3385_s6, [#allocation4]  }
 0x824   :  { %2595 = dma.done.wait [#allocation4], 128  }
 0x825   :  { %2596 = vsyncadd [#allocation4], 4294967168 }
 0x826   :  { %1761 = vsyncpa [#allocation3], 1 }
 0x827   :  { %1762 = vsyncpa [#allocation4], 1 }

</bundles_post_ra>
